<compile_context>
chip_gen: v6e
topology: v6e:2x2x1
jax: 0.10.0
libtpu: 0.0.40
codegen_flags: <defaults>
</compile_context>

<pallas_src>
import functools

import jax
import jax.numpy as jnp
import numpy as np
from jax.experimental import pallas as pl
from jax.experimental.pallas import tpu as pltpu


def _group_attention_kernel(x_ref, w_ref, b_ref, o_ref, *, seq_len):
    """One grid step: block_b independent (L, E) attention instances.

    x_ref : (block_b * L, E)   activations (bf16 or f32), batch flattened in M
    w_ref : (E, 4E)            packed [wq | wk | wv | wo]  (VMEM-resident)
    b_ref : (1, 4E)            packed [bq | bk | bv | bo]  (f32, resident)
    o_ref : (block_b // 4, 4E) lane-dense packed per-instance means
    """
    E = x_ref.shape[-1]
    L = seq_len
    Bt = x_ref.shape[0] // L

    x2 = x_ref[...]                                   # (Bt*L, E)

    def proj(col):
        # Static column view of the packed weight ref -> no XLU lane selects.
        w = w_ref[:, col * E:(col + 1) * E]           # (E, E) bf16
        b = b_ref[:, col * E:(col + 1) * E]           # (1, E) f32
        return jnp.dot(x2, w, preferred_element_type=jnp.float32) + b

    q = proj(0).reshape(Bt, L, E)                     # f32
    k = proj(1).reshape(Bt, L, E)
    v = proj(2).reshape(Bt, L, E)

    # Single head -> head_dim == E; PyTorch scales by 1/sqrt(head_dim).
    scale = 1.0 / float(np.sqrt(E))
    s = jnp.einsum('bqd,bkd->bqk', q, k,
                   preferred_element_type=jnp.float32) * scale    # (Bt, L, L)

    # Numerically-stable softmax (f32 on VPU/EUP; works on v5e too).
    m = jnp.max(s, axis=-1, keepdims=True)
    p = jnp.exp(s - m)
    p = p * pl.reciprocal(jnp.sum(p, axis=-1, keepdims=True), approx=True)

    ctx = jnp.einsum('bqk,bkd->bqd', p, v,
                     preferred_element_type=jnp.float32)          # (Bt, L, E)

    # Mean over the sequence is linear -> hoist before the output projection.
    ctx_mean = jnp.mean(ctx, axis=1)                              # (Bt, E)
    wo = w_ref[:, 3 * E:4 * E].astype(jnp.float32)
    out = (jnp.dot(ctx_mean, wo, preferred_element_type=jnp.float32)
           + b_ref[:, 3 * E:4 * E])                               # (Bt, E)

    # Lane-dense packing: 4 instances per 128-lane output row.
    # Output row r, lane group j  <-  local instance j*(Bt//4) + r.
    quarter = Bt // 4
    for j in range(4):
        o_ref[:, j * E:(j + 1) * E] = (
            out[j * quarter:(j + 1) * quarter, :].astype(o_ref.dtype))


def group_attention(x, w_packed, b_packed, *, block_b=32):
    """x: (B, L, E); w_packed: (E, 4E) = [wq|wk|wv|wo]; b_packed: (1, 4E).

    Returns (B, E): per-instance mean over the sequence of the attention
    output (== GroupAttention.forward's `out.mean(dim=0)` for each instance).
    """
    B, L, E = x.shape
    assert w_packed.shape == (E, 4 * E) and b_packed.shape == (1, 4 * E)
    assert block_b % 4 == 0 and B % block_b == 0
    nb = B // block_b

    # Flatten batch into the M dim so the QKV projection is one MXU-filling
    # (block_b*L, E) x (E, E) matmul per Q/K/V.
    x2d = x.reshape(B * L, E)

    out_packed = pl.pallas_call(
        functools.partial(_group_attention_kernel, seq_len=L),
        out_shape=jax.ShapeDtypeStruct((B // 4, 4 * E), jnp.float32),
        grid=(nb,),
        in_specs=[
            pl.BlockSpec((block_b * L, E), lambda b: (b, 0)),   # streamed x
            pl.BlockSpec((E, 4 * E), lambda b: (0, 0)),         # resident W
            pl.BlockSpec((1, 4 * E), lambda b: (0, 0)),         # resident b
        ],
        out_specs=pl.BlockSpec((block_b // 4, 4 * E), lambda b: (b, 0)),
        compiler_params=pltpu.CompilerParams(
            dimension_semantics=("parallel",)),   # shard batch over v7x's 2 TCs
    )(x2d, w_packed, b_packed)

    # Unpack lane-dense rows back to (B, E): within block b, output row r and
    # lane group j hold instance  b*block_b + j*(block_b//4) + r.
    out = (out_packed.reshape(nb, block_b // 4, 4, E)
           .transpose(0, 2, 1, 3)
           .reshape(B, E))
    return out


def _reference_batch(x, w, b):
    """Pure-JAX f32 reference: torch.nn.MultiheadAttention (1 head) + mean."""
    E = x.shape[-1]
    wq, wk, wv, wo = w[:, :E], w[:, E:2 * E], w[:, 2 * E:3 * E], w[:, 3 * E:]
    bq, bk, bv, bo = b[:, :E], b[:, E:2 * E], b[:, 2 * E:3 * E], b[:, 3 * E:]
    q = x @ wq + bq
    k = x @ wk + bk
    v = x @ wv + bv
    s = jnp.einsum('bqd,bkd->bqk', q, k) / jnp.sqrt(jnp.float32(E))
    p = jax.nn.softmax(s, axis=-1)
    out = jnp.einsum('bqk,bkd->bqd', p, v) @ wo + bo
    return jnp.mean(out, axis=1)                                  # (B, E)


if __name__ == "__main__":
    # B independent GroupAttention instances; per-instance shapes match the
    # PyTorch forward: seq_len L=8, embed_dim E=32, num_heads=1 (batch added
    # internally by unsqueeze(1)).
    B, L, E = 128, 8, 32

    key = jax.random.PRNGKey(0)
    kx, kin, kbin, kwo, kbo = jax.random.split(key, 5)

    x = jax.random.normal(kx, (B, L, E), dtype=jnp.float32)

    # nn.MultiheadAttention parameters (deterministic synthetic init):
    #   in_proj_weight: (3E, E), in_proj_bias: (3E,), out_proj: Linear(E, E)
    in_proj_w = jax.random.normal(kin, (3 * E, E), dtype=jnp.float32) * (1.0 / np.sqrt(E))
    in_proj_b = jax.random.normal(kbin, (3 * E,), dtype=jnp.float32) * 0.01
    out_proj_w = jax.random.normal(kwo, (E, E), dtype=jnp.float32) * (1.0 / np.sqrt(E))
    out_proj_b = jax.random.normal(kbo, (E,), dtype=jnp.float32) * 0.01

    # Pre-transpose to (E_in, E_out); biases as (1, E).
    wq = in_proj_w[0 * E:1 * E].T
    wk = in_proj_w[1 * E:2 * E].T
    wv = in_proj_w[2 * E:3 * E].T
    wo = out_proj_w.T
    bq = in_proj_b[0 * E:1 * E].reshape(1, E)
    bk = in_proj_b[1 * E:2 * E].reshape(1, E)
    bv = in_proj_b[2 * E:3 * E].reshape(1, E)
    bo = out_proj_b.reshape(1, E)

    # Host-side packing: one weight slab + one bias slab. bf16 MXU operands
    # for x / weights; biases (and all in-kernel elementwise math) stay f32.
    w_packed = jnp.concatenate([wq, wk, wv, wo], axis=1).astype(jnp.bfloat16)  # (E, 4E)
    b_packed = jnp.concatenate([bq, bk, bv, bo], axis=1)                       # (1, 4E) f32
    x_bf = x.astype(jnp.bfloat16)

    out = group_attention(x_bf, w_packed, b_packed, block_b=32)
    out = jax.block_until_ready(out)

    # Reference in f32 from the SAME bf16-rounded operands the kernel sees, so
    # the only kernel-vs-reference deltas are accumulation order and the EUP
    # approximate reciprocal in the softmax denominator.
    ref = _reference_batch(x_bf.astype(jnp.float32),
                           w_packed.astype(jnp.float32),
                           b_packed)
    np.testing.assert_allclose(np.asarray(out), np.asarray(ref),
                               rtol=2e-3, atol=2e-3)

    print("KERNEL_OK")
</pallas_src>

<mosaic_0001>
module attributes {stable_mosaic.version = 11 : i64} {
  func.func @_group_attention_kernel(%arg0: i32, %arg1: memref<256x32xbf16, #tpu.memory_space<vmem>>, %arg2: memref<32x128xbf16, #tpu.memory_space<vmem>>, %arg3: memref<1x128xf32, #tpu.memory_space<vmem>>, %arg4: memref<8x128xf32, #tpu.memory_space<vmem>>) attributes {dimension_semantics = [#tpu.dimension_semantics<parallel>], iteration_bounds = array<i64: 4>, scalar_prefetch = 0 : i64, scratch_operands = 0 : i64, tpu.core_type = #tpu.core_type<tc>, window_params = [{transform_indices = @transform_0, window_bounds = array<i64: 256, 32>}, {pipeline_mode = #tpu.pipeline_mode<synchronous>, transform_indices = @transform_1, window_bounds = array<i64: 32, 128>}, {pipeline_mode = #tpu.pipeline_mode<synchronous>, transform_indices = @transform_2, window_bounds = array<i64: 1, 128>}, {transform_indices = @transform_3, window_bounds = array<i64: 8, 128>}]} {
    %c0 = arith.constant 0 : index
    %c0_0 = arith.constant 0 : index
    %0 = vector.load %arg1[%c0, %c0_0] : memref<256x32xbf16, #tpu.memory_space<vmem>>, vector<256x32xbf16>
    %c0_1 = arith.constant 0 : index
    %c0_2 = arith.constant 0 : index
    %1 = vector.load %arg2[%c0_1, %c0_2] : memref<32x128xbf16, #tpu.memory_space<vmem>>, vector<32x32xbf16>
    %c0_3 = arith.constant 0 : index
    %c0_4 = arith.constant 0 : index
    %2 = vector.load %arg3[%c0_3, %c0_4] : memref<1x128xf32, #tpu.memory_space<vmem>>, vector<1x32xf32>
    %cst = arith.constant dense<0.000000e+00> : vector<256x32xf32>
    %3 = tpu.matmul %0, %1, %cst {dimension_numbers = #tpu.dot_dimension_numbers<[1], [0], [0], [1], [0, 0, 1, 1], [], []>} : vector<256x32xbf16>, vector<32x32xbf16>, vector<256x32xf32> -> vector<256x32xf32>
    %4 = vector.broadcast %2 : vector<1x32xf32> to vector<256x32xf32>
    %5 = arith.addf %3, %4 : vector<256x32xf32>
    %6 = vector.shape_cast %5 : vector<256x32xf32> to vector<32x8x32xf32>
    %c0_5 = arith.constant 0 : index
    %c32 = arith.constant 32 : index
    %7 = vector.load %arg2[%c0_5, %c32] : memref<32x128xbf16, #tpu.memory_space<vmem>>, vector<32x32xbf16>
    %c0_6 = arith.constant 0 : index
    %c32_7 = arith.constant 32 : index
    %8 = vector.load %arg3[%c0_6, %c32_7] : memref<1x128xf32, #tpu.memory_space<vmem>>, vector<1x32xf32>
    %cst_8 = arith.constant dense<0.000000e+00> : vector<256x32xf32>
    %9 = tpu.matmul %0, %7, %cst_8 {dimension_numbers = #tpu.dot_dimension_numbers<[1], [0], [0], [1], [0, 0, 1, 1], [], []>} : vector<256x32xbf16>, vector<32x32xbf16>, vector<256x32xf32> -> vector<256x32xf32>
    %10 = vector.broadcast %8 : vector<1x32xf32> to vector<256x32xf32>
    %11 = arith.addf %9, %10 : vector<256x32xf32>
    %12 = vector.shape_cast %11 : vector<256x32xf32> to vector<32x8x32xf32>
    %c0_9 = arith.constant 0 : index
    %c64 = arith.constant 64 : index
    %13 = vector.load %arg2[%c0_9, %c64] : memref<32x128xbf16, #tpu.memory_space<vmem>>, vector<32x32xbf16>
    %c0_10 = arith.constant 0 : index
    %c64_11 = arith.constant 64 : index
    %14 = vector.load %arg3[%c0_10, %c64_11] : memref<1x128xf32, #tpu.memory_space<vmem>>, vector<1x32xf32>
    %cst_12 = arith.constant dense<0.000000e+00> : vector<256x32xf32>
    %15 = tpu.matmul %0, %13, %cst_12 {dimension_numbers = #tpu.dot_dimension_numbers<[1], [0], [0], [1], [0, 0, 1, 1], [], []>} : vector<256x32xbf16>, vector<32x32xbf16>, vector<256x32xf32> -> vector<256x32xf32>
    %16 = vector.broadcast %14 : vector<1x32xf32> to vector<256x32xf32>
    %17 = arith.addf %15, %16 : vector<256x32xf32>
    %18 = vector.shape_cast %17 : vector<256x32xf32> to vector<32x8x32xf32>
    "tpu.trace_start"() <{level = 10 : i32, message = "bqd,bkd->bqk"}> : () -> ()
    %cst_13 = arith.constant dense<0.000000e+00> : vector<32x8x8xf32>
    %19 = tpu.matmul %6, %12, %cst_13 {dimension_numbers = #tpu.dot_dimension_numbers<[2], [2], [1], [1], [0, 0, 0, 1, 1, 1], [0], [0]>} : vector<32x8x32xf32>, vector<32x8x32xf32>, vector<32x8x8xf32> -> vector<32x8x8xf32>
    "tpu.trace_stop"() : () -> ()
    %cst_14 = arith.constant 0.176776692 : f32
    %20 = vector.broadcast %cst_14 : f32 to vector<32x8x8xf32>
    %21 = arith.mulf %19, %20 : vector<32x8x8xf32>
    %cst_15 = arith.constant dense<0xFF800000> : vector<32x8xf32>
    %22 = vector.multi_reduction <maximumf>, %21, %cst_15 [2] : vector<32x8x8xf32> to vector<32x8xf32>
    %23 = vector.shape_cast %22 : vector<32x8xf32> to vector<32x8x1xf32>
    %24 = vector.broadcast %23 : vector<32x8x1xf32> to vector<32x8x8xf32>
    %25 = arith.subf %21, %24 : vector<32x8x8xf32>
    %26 = math.exp %25 : vector<32x8x8xf32>
    %cst_16 = arith.constant dense<0.000000e+00> : vector<32x8xf32>
    %27 = vector.multi_reduction <add>, %26, %cst_16 [2] : vector<32x8x8xf32> to vector<32x8xf32>
    %28 = vector.shape_cast %27 : vector<32x8xf32> to vector<32x8x1xf32>
    %29 = tpu.reciprocal %28 {approx = true} : vector<32x8x1xf32> -> vector<32x8x1xf32>
    %30 = vector.broadcast %29 : vector<32x8x1xf32> to vector<32x8x8xf32>
    %31 = arith.mulf %26, %30 : vector<32x8x8xf32>
    "tpu.trace_start"() <{level = 10 : i32, message = "bqk,bkd->bqd"}> : () -> ()
    %cst_17 = arith.constant dense<0.000000e+00> : vector<32x8x32xf32>
    %32 = tpu.matmul %31, %18, %cst_17 {dimension_numbers = #tpu.dot_dimension_numbers<[2], [1], [1], [2], [0, 0, 0, 1, 1, 2], [0], [0]>} : vector<32x8x8xf32>, vector<32x8x32xf32>, vector<32x8x32xf32> -> vector<32x8x32xf32>
    "tpu.trace_stop"() : () -> ()
    %cst_18 = arith.constant dense<0.000000e+00> : vector<32x32xf32>
    %33 = vector.multi_reduction <add>, %32, %cst_18 [1] : vector<32x8x32xf32> to vector<32x32xf32>
    %cst_19 = arith.constant 8.000000e+00 : f32
    %34 = vector.broadcast %cst_19 : f32 to vector<32x32xf32>
    %35 = arith.divf %33, %34 : vector<32x32xf32>
    %c0_20 = arith.constant 0 : index
    %c96 = arith.constant 96 : index
    %36 = vector.load %arg2[%c0_20, %c96] : memref<32x128xbf16, #tpu.memory_space<vmem>>, vector<32x32xbf16>
    %37 = arith.extf %36 : vector<32x32xbf16> to vector<32x32xf32>
    %cst_21 = arith.constant dense<0.000000e+00> : vector<32x32xf32>
    %38 = tpu.matmul %35, %37, %cst_21 {dimension_numbers = #tpu.dot_dimension_numbers<[1], [0], [0], [1], [0, 0, 1, 1], [], []>} : vector<32x32xf32>, vector<32x32xf32>, vector<32x32xf32> -> vector<32x32xf32>
    %c0_22 = arith.constant 0 : index
    %c96_23 = arith.constant 96 : index
    %39 = vector.load %arg3[%c0_22, %c96_23] : memref<1x128xf32, #tpu.memory_space<vmem>>, vector<1x32xf32>
    %40 = vector.broadcast %39 : vector<1x32xf32> to vector<32x32xf32>
    %41 = arith.addf %38, %40 : vector<32x32xf32>
    %42 = vector.extract_strided_slice %41 {offsets = [0, 0], sizes = [8, 32], strides = [1, 1]} : vector<32x32xf32> to vector<8x32xf32>
    %c0_24 = arith.constant 0 : index
    %c0_25 = arith.constant 0 : index
    %43 = vector.load %arg4[%c0_24, %c0_25] : memref<8x128xf32, #tpu.memory_space<vmem>>, vector<8x32xf32>
    tpu.vector_store %arg4[%c0_24, %c0_25], %42 {strides = array<i32>} : memref<8x128xf32, #tpu.memory_space<vmem>>, vector<8x32xf32>,
    %44 = vector.extract_strided_slice %41 {offsets = [8, 0], sizes = [8, 32], strides = [1, 1]} : vector<32x32xf32> to vector<8x32xf32>
    %c0_26 = arith.constant 0 : index
    %c32_27 = arith.constant 32 : index
    %45 = vector.load %arg4[%c0_26, %c32_27] : memref<8x128xf32, #tpu.memory_space<vmem>>, vector<8x32xf32>
    tpu.vector_store %arg4[%c0_26, %c32_27], %44 {strides = array<i32>} : memref<8x128xf32, #tpu.memory_space<vmem>>, vector<8x32xf32>,
    %46 = vector.extract_strided_slice %41 {offsets = [16, 0], sizes = [8, 32], strides = [1, 1]} : vector<32x32xf32> to vector<8x32xf32>
    %c0_28 = arith.constant 0 : index
    %c64_29 = arith.constant 64 : index
    %47 = vector.load %arg4[%c0_28, %c64_29] : memref<8x128xf32, #tpu.memory_space<vmem>>, vector<8x32xf32>
    tpu.vector_store %arg4[%c0_28, %c64_29], %46 {strides = array<i32>} : memref<8x128xf32, #tpu.memory_space<vmem>>, vector<8x32xf32>,
    %48 = vector.extract_strided_slice %41 {offsets = [24, 0], sizes = [8, 32], strides = [1, 1]} : vector<32x32xf32> to vector<8x32xf32>
    %c0_30 = arith.constant 0 : index
    %c96_31 = arith.constant 96 : index
    %49 = vector.load %arg4[%c0_30, %c96_31] : memref<8x128xf32, #tpu.memory_space<vmem>>, vector<8x32xf32>
    tpu.vector_store %arg4[%c0_30, %c96_31], %48 {strides = array<i32>} : memref<8x128xf32, #tpu.memory_space<vmem>>, vector<8x32xf32>,
    return
  }
  func.func @transform_0(%arg0: i32) -> (i32, i32) {
    %c0_i32 = arith.constant 0 : i32
    %c0_i32_0 = arith.constant 0 : i32
    return %arg0, %c0_i32 : i32, i32
  }
  func.func @transform_1(%arg0: i32) -> (i32, i32) {
    %c0_i32 = arith.constant 0 : i32
    %c0_i32_0 = arith.constant 0 : i32
    %c0_i32_1 = arith.constant 0 : i32
    return %c0_i32, %c0_i32_0 : i32, i32
  }
  func.func @transform_2(%arg0: i32) -> (i32, i32) {
    %c0_i32 = arith.constant 0 : i32
    %c0_i32_0 = arith.constant 0 : i32
    %c0_i32_1 = arith.constant 0 : i32
    return %c0_i32, %c0_i32_0 : i32, i32
  }
  func.func @transform_3(%arg0: i32) -> (i32, i32) {
    %c0_i32 = arith.constant 0 : i32
    %c0_i32_0 = arith.constant 0 : i32
    return %arg0, %c0_i32 : i32, i32
  }
}

</mosaic_0001>

<bundles_post_ra>
// kernel: tpu_custom_call.1
= control target key start
LH: loop header
LB: loop body
LE: loop exit
PB: predicated region body
PF: predicated region fallthrough
CT: control target
= control target key end

     0   :  { %8 = vsyncpa [#allocation3], 0  ;;  %s8823_s0 = inlined_call_operand.vmem [shape: bf16[1024,32], index: 0, kind: input, shape index: {}]   ;;  %s8824_s1 = inlined_call_operand.vmem [shape: bf16[32,128], index: 1, kind: input, shape index: {}]   ;;  %s8825_s2 = inlined_call_operand.vmem [shape: f32[1,128], index: 2, kind: input, shape index: {}]   ;;  %s8826_s3 = inlined_call_operand.hbm [shape: f32[32,128], index: 3, kind: output, shape index: {}]  }
   0x1   :  { %10 = vsyncpa [#allocation3 + $0x1], 0  ;;  %s7651_s12 = smov 0   ;;  %s7653_s13 = smov 0  }
   0x2   :  { %s7655_s14 = smov 0   ;;  %s7657_s15 = smov 0  }
   0x3 LB: > { %s7672_s16 = sadd.s32 4294967295, %s7623_s15   ;;  %s6552_s17 = sadd.s32 4294967294, %s7623_s15   ;;  %s7623_s15 = sphi %s7657_s15, %s8870_s15   ;;  %s7619_s14 = sphi %s7655_s14, %s8869_s14   ;;  %s7615_s13 = sphi %s7653_s13, %s8868_s13   ;;  %s7611_s12 = sphi %s7651_s12, %s8867_s12  }
   0x4   : > { %s7676_s18 = sadd.s32 1, %s7623_s15   ;;  %s91_s19 = sadd.s32 1, %s7619_s14 }
   0x5   : > { %s88_s20 = ssub.s32 %s7623_s15, %s7676_s18  ;;  %p101_p0 = scmp.ne.s32.totalorder %s7619_s14, %s7615_s13 }
   0x6   : > { %p89_p1 = scmp.eq.s32.totalorder %s88_s20, 0  ;;  %p102_p2 = scmp.eq.s32.totalorder %s7672_s16, 3 }
   0x7   : > { %p107_p3 = scmp.ne.s32.totalorder %s7615_s13, %s7611_s12  ;;  %p108_p4 = scmp.eq.s32.totalorder %s6552_s17, 3 }
   0x8   : > { %s7687_s21 = scalar_select %p89_p1, %s7619_s14, %s91_s19  }
   0x9   : > { %p7689_p5 = por %p102_p2, %p101_p0  ;;  %p7693_p6 = por %p108_p4, %p107_p3 }
   0xa   : > { %p6555_p7 = scmp.ge.s32.totalorder %s7623_s15, 1  ;;  %p141_p8 = scmp.lt.s32.totalorder %s7623_s15, 5 }
   0xc   : > { %p142_p9 = pnand %p6555_p7, %p141_p8 }
   0xe   : > { %145 = sbr.rel (%p142_p9) target bundleno = 1510 (0x5e6), region = 32 }
  0x13   : > { %v7416_v0 = vld [vmem:[%s8824_s1 + $0x8] sm:$0xff]   ;;  %s6557_s26 = sshll.u32 %s7672_s16, 5  ;;  %s7625_s27 = smov 96   ;;  %v7417_v1 = vld [vmem:[%s8824_s1] sm:$0xff]   ;;  %vm307_vm0 = vcmask 261120   ;;  %v8827_v24 = vmov 0.0  }
  0x14   : > { %519 = vrot.lane.b32.xlu0 %v7416_v0, %s7625_s27  ;;  %6930 = vmatprep.subr.bf16.mxu0 %v7416_v0  ;;  %p166_p10 = scmp.lt.s32.totalorder %s6557_s26, 127  ;;  %v7738_v11 = vld [vmem:[%s8825_s2] ss:$0 sm:$0xff]  ;;  %s7626_s9 = smov 64   ;;  %vm7628_vm1 = vmmov 0   ;;  %vm3321_vm2 = vcmask 64512  }
  0x15   : > { %6931 = vmatpush3.bf16.msra.mxu0 %v7416_v0  ;;  %523 = vrot.lane.b32.xlu1 %v7738_v11, %s7625_s27  ;;  %s7629_s25 = smov 32   ;;  %vm6313_vm3 = vcmask 1041409   ;;  %vm6315_vm4 = vcmask 1042434   ;;  %vm6317_vm5 = vcmask 1043459   ;;  %vm6319_vm6 = vcmask 1044484   ;;  %s162_s29 = sand.u32 1, %s7615_s13  }
  0x16   : > { %6932 = vmatprep.subr.bf16.mxu0 %v7417_v1  ;;  %s8872_s26 = smov (!%p166_p10, %s6557_s26), 127  ;;  %vm6321_vm7 = vcmask 1045509   ;;  %vm6323_vm8 = vcmask 1046534   ;;  %vm6325_vm9 = vcmask 1047559   ;;  %vm6465_vm10 = vcmask 523520   ;;  %s6728_s5 = sshll.u32 %s7672_s16, 7 }
  0x17   : > { %s6558_s30 = sshll.u32 %s8872_s26, 2  ;;  %vm6471_vm11 = vcmask 785920   ;;  %vm6477_vm12 = vcmask 1048320   ;;  %s8782_s10 = scalar_lea.hbm %s8826_s3, %s6728_s5 }
  0x18   : > { %517 = vrot.lane.b32.xlu0 %v7417_v1, %s7625_s27  ;;  %s7711_s6 = scalar_lea.vmem %s8823_s0, %s6558_s30  ;;  %s6556_s30 = sshll.u32 %s162_s29, 3 }
  0x19   : > { %6933 = vmatpush3.bf16.msra.mxu0 %v7417_v1  ;;  %v7418_v2 = vld [vmem:[%s7711_s6] sm:$0xff]   ;;  %v7715_v3 = vld [vmem:[%s7711_s6 + $0x8] sm:$0xff]   ;;  %v7420_v4 = vld [vmem:[%s7711_s6 + $0x10] sm:$0xff]   ;;  %689 = vrot.lane.b32.xlu1 %v7416_v0, %s7626_s9  ;;  %s164_s4 = scalar_lea.vmem [#allocation2], %s6556_s30  ;;  %s7630_s16 = smov [#allocation2]  }
  0x1a   : > { %6970 = vmatprep.mubr.msk.bf16.mxu1 %vm307_vm0, %v7418_v2  ;;  %6934 = vmatprep.mubr.msk.bf16.mxu0 %vm307_vm0, %v7418_v2  ;;  %v7421_v5 = vld [vmem:[%s7711_s6 + $0x18] sm:$0xff]   ;;  %v7422_v6 = vld [vmem:[%s7711_s6 + $0x20] sm:$0xff]   ;;  %v7423_v7 = vld [vmem:[%s7711_s6 + $0x28] sm:$0xff]   ;;  %s7567_s11 = sshll.u32 %s7630_s16, 4  ;;  %s7568_s11 = int_to_ptr.vmem [resolvable:$false] %s7567_s11 }
  0x1b   : > { %v7424_v8 = vld [vmem:[%s7711_s6 + $0x30] sm:$0xff]   ;;  %v7425_v9 = vld [vmem:[%s7711_s6 + $0x38] sm:$0xff]   ;;  %v7426_v10 = vld [vmem:[%s7711_s6 + $0x40] sm:$0xff]   ;;  %s7569_s17 = scalar_lea.vmem %s7568_s11, 256 }
  0x1c   : > { %6935 = vmatmul.mubr.msk.bf16.vlgmr.msra.gmra.mxu0 %vm307_vm0, %v7715_v3  ;;  %v7427_v12 = vld [vmem:[%s7711_s6 + $0x48] sm:$0xff]   ;;  %v7428_v13 = vld [vmem:[%s7711_s6 + $0x50] sm:$0xff]   ;;  %687 = vrot.lane.b32.xlu0 %v7417_v1, %s7626_s9  ;;  %v7429_v14 = vld [vmem:[%s7711_s6 + $0x58] sm:$0xff]  }
  0x1d   : > { %6938 = vmatprep.mubr.msk.bf16.mxu0 %vm307_vm0, %v7420_v4  ;;  %v7430_v15 = vld [vmem:[%s7711_s6 + $0x60] sm:$0xff]   ;;  %v7431_v16 = vld [vmem:[%s7711_s6 + $0x68] sm:$0xff]   ;;  %v7432_v17 = vld [vmem:[%s7711_s6 + $0x70] sm:$0xff]  }
  0x1e   : > { %v7433_v18 = vld [vmem:[%s7711_s6 + $0x78] sm:$0xff]   ;;  %s6493_s6 = sshll.u32 %s164_s4, 4  ;;  %s8784_s6 = int_to_ptr.vmem [resolvable:$true] %s6493_s6 }
  0x1f   : > { %p7570_p0 = scmp.lt.s32.totalorder %s8784_s6, %s7568_s11 }
  0x24   : > { %6939 = vmatmul.mubr.msk.bf16.gmra.mxu0 %vm307_vm0, %v7421_v5 }
  0x25   : > { %6942 = vmatprep.mubr.msk.bf16.mxu0 %vm307_vm0, %v7422_v6 }
  0x2c   : > { %6943 = vmatmul.mubr.msk.bf16.gmra.mxu0 %vm307_vm0, %v7423_v7 }
  0x2d   : > { %6946 = vmatprep.mubr.msk.bf16.mxu0 %vm307_vm0, %v7424_v8 }
  0x34   : > { %6947 = vmatmul.mubr.msk.bf16.gmra.mxu0 %vm307_vm0, %v7425_v9 }
  0x35   : > { %6950 = vmatprep.mubr.msk.bf16.mxu0 %vm307_vm0, %v7426_v10 }
  0x3c   : > { %6951 = vmatmul.mubr.msk.bf16.gmra.mxu0 %vm307_vm0, %v7427_v12 }
  0x3d   : > { %6954 = vmatprep.mubr.msk.bf16.mxu0 %vm307_vm0, %v7428_v13 }
  0x44   : > { %6955 = vmatmul.mubr.msk.bf16.gmra.mxu0 %vm307_vm0, %v7429_v14 }
  0x45   : > { %6958 = vmatprep.mubr.msk.bf16.mxu0 %vm307_vm0, %v7430_v15 }
  0x4c   : > { %6959 = vmatmul.mubr.msk.bf16.gmra.mxu0 %vm307_vm0, %v7431_v16 }
  0x4d   : > { %6962 = vmatprep.mubr.msk.bf16.mxu0 %vm307_vm0, %v7432_v17 }
  0x54   : > { %6963 = vmatmul.mubr.msk.bf16.gmra.mxu0 %vm307_vm0, %v7433_v18 }
  0x55   : > { %7006 = vmatprep.mubr.msk.bf16.mxu0 %vm307_vm0, %v7418_v2 }
  0x86   : > { %v520_v19 = vpop.permute.xlu0 %519 }
  0x87   : > { %6966 = vmatprep.subr.bf16.mxu1 %v520_v19  ;;  %v7768_v21 = vpop.permute.xlu1 %523 }
  0x88   : > { %6967 = vmatpush3.bf16.msra.mxu1 %v520_v19 }
  0x8a   : > { %v518_v20 = vpop.permute.xlu0 %517 }
  0x8b   : > { %6968 = vmatprep.subr.bf16.mxu1 %v518_v20  ;;  %v690_v22 = vpop.permute.xlu1 %689 }
  0x8c   : > { %6969 = vmatpush3.bf16.msra.mxu1 %v518_v20  ;;  %7002 = vmatprep.subr.bf16.mxu0 %v690_v22 }
  0x8d   : > { %7003 = vmatpush3.bf16.msra.mxu0 %v690_v22  ;;  %7038 = vmatprep.subr.mxu1 %v8827_v24 }
  0x8e   : > { %v688_v23 = vpop.permute.xlu0 %687 }
  0x8f   : > { %6971 = vmatmul.mubr.msk.bf16.vlgmr.msra.gmra.mxu1 %vm307_vm0, %v7715_v3  ;;  %7004 = vmatprep.subr.bf16.mxu0 %v688_v23 }
  0x90   : > { %6974 = vmatprep.mubr.msk.bf16.mxu1 %vm307_vm0, %v7420_v4 }
  0x91   : > { %7005 = vmatpush3.bf16.msra.mxu0 %v688_v23 }
  0x92   : > { %7128 = vmatprep.subr.mxu0 %v8827_v24 }
  0x94   : > { %7007 = vmatmul.mubr.msk.bf16.vlgmr.msra.gmra.mxu0 %vm307_vm0, %v7715_v3 }
  0x95   : > { %7010 = vmatprep.mubr.msk.bf16.mxu0 %vm307_vm0, %v7420_v4 }
  0x97   : > { %6975 = vmatmul.mubr.msk.bf16.gmra.mxu1 %vm307_vm0, %v7421_v5 }
  0x98   : > { %6978 = vmatprep.mubr.msk.bf16.mxu1 %vm307_vm0, %v7422_v6 }
  0x9c   : > { %7011 = vmatmul.mubr.msk.bf16.gmra.mxu0 %vm307_vm0, %v7421_v5 }
  0x9d   : > { %7014 = vmatprep.mubr.msk.bf16.mxu0 %vm307_vm0, %v7422_v6 }
  0x9f   : > { %6979 = vmatmul.mubr.msk.bf16.gmra.mxu1 %vm307_vm0, %v7423_v7 }
  0xa0   : > { %6982 = vmatprep.mubr.msk.bf16.mxu1 %vm307_vm0, %v7424_v8 }
  0xa4   : > { %7015 = vmatmul.mubr.msk.bf16.gmra.mxu0 %vm307_vm0, %v7423_v7 }
  0xa5   : > { %7018 = vmatprep.mubr.msk.bf16.mxu0 %vm307_vm0, %v7424_v8 }
  0xa7   : > { %6983 = vmatmul.mubr.msk.bf16.gmra.mxu1 %vm307_vm0, %v7425_v9 }
  0xa8   : > { %6986 = vmatprep.mubr.msk.bf16.mxu1 %vm307_vm0, %v7426_v10 }
  0xac   : > { %7019 = vmatmul.mubr.msk.bf16.gmra.mxu0 %vm307_vm0, %v7425_v9 }
  0xad   : > { %7022 = vmatprep.mubr.msk.bf16.mxu0 %vm307_vm0, %v7426_v10 }
  0xaf   : > { %6987 = vmatmul.mubr.msk.bf16.gmra.mxu1 %vm307_vm0, %v7427_v12 }
  0xb0   : > { %6990 = vmatprep.mubr.msk.bf16.mxu1 %vm307_vm0, %v7428_v13 }
  0xb4   : > { %7023 = vmatmul.mubr.msk.bf16.gmra.mxu0 %vm307_vm0, %v7427_v12 }
  0xb5   : > { %7026 = vmatprep.mubr.msk.bf16.mxu0 %vm307_vm0, %v7428_v13 }
  0xb7   : > { %6991 = vmatmul.mubr.msk.bf16.gmra.mxu1 %vm307_vm0, %v7429_v14 }
  0xb8   : > { %6994 = vmatprep.mubr.msk.bf16.mxu1 %vm307_vm0, %v7430_v15 }
  0xbc   : > { %7027 = vmatmul.mubr.msk.bf16.gmra.mxu0 %vm307_vm0, %v7429_v14 }
  0xbd   : > { %7030 = vmatprep.mubr.msk.bf16.mxu0 %vm307_vm0, %v7430_v15 }
  0xbf   : > { %6995 = vmatmul.mubr.msk.bf16.gmra.mxu1 %vm307_vm0, %v7431_v16 }
  0xc0   : > { %6998 = vmatprep.mubr.msk.bf16.mxu1 %vm307_vm0, %v7432_v17 }
  0xc4   : > { %7031 = vmatmul.mubr.msk.bf16.gmra.mxu0 %vm307_vm0, %v7431_v16 }
  0xc5   : > { %7034 = vmatprep.mubr.msk.bf16.mxu0 %vm307_vm0, %v7432_v17 }
  0xc7   : > { %6999 = vmatmul.mubr.msk.bf16.gmra.mxu1 %vm307_vm0, %v7433_v18 }
  0xc8   : > { %7040 = vmatprep.mubr.msk.f32.mxu1 %vm7628_vm1, %v8827_v24 }
  0xcc   : > { %7035 = vmatmul.mubr.msk.bf16.gmra.mxu0 %vm307_vm0, %v7433_v18 }
  0xcd   : > { %7130 = vmatprep.mubr.msk.f32.mxu0 %vm7628_vm1, %v8827_v24 }
  0xdc   : > { %v6936_v25 = vpop.f32.mrf.mxu0 }
  0xdd   : > { %v399_v56 = vadd.f32 %v6936_v25, %v7738_v11 }
  0xde   : > { %v390_v26 = vpop.f32.mrf.mxu0 }
  0xdf   : > { %v391_v46 = vadd.f32 %v7738_v11, %v390_v26 }
  0xe0   : > { %v6937_v27 = vpop.f32.mrf.mxu0 }
  0xe1   : > { %v402_v61 = vadd.f32 %v6937_v27, %v7738_v11 }
  0xe2   : > { %v393_v28 = vpop.f32.mrf.mxu0 }
  0xe3   : > { %v394_v51 = vadd.f32 %v7738_v11, %v393_v28 }
  0xe4   : > { %v7799_v29 = vpop.f32.mrf.mxu0 }
  0xe5   : > { %v415_v13 = vadd.f32 %v7799_v29, %v7738_v11 }
  0xe6   : > { %v406_v30 = vpop.f32.mrf.mxu0 }
  0xe7   : > { %v407_v2 = vadd.f32 %v7738_v11, %v406_v30 }
  0xe8   : > { %v7801_v31 = vpop.f32.mrf.mxu0 }
  0xe9   : > { %v418_v19 = vadd.f32 %v7801_v31, %v7738_v11 }
  0xea   : > { %v409_v32 = vpop.f32.mrf.mxu0 }
  0xeb   : > { %v410_v7 = vadd.f32 %v7738_v11, %v409_v32 }
  0xec   : > { %v7803_v33 = vpop.f32.mrf.mxu0 }
  0xee   : > { %v7805_v34 = vpop.f32.mrf.mxu0 }
  0xef   : > { %v423_v27 = vadd.f32 %v7738_v11, %v7805_v34 }
  0xf0   : > { %v7807_v35 = vpop.f32.mrf.mxu0 }
  0xf2   : > { %v7809_v36 = vpop.f32.mrf.mxu0 }
  0xf3   : > { %v426_v32 = vadd.f32 %v7738_v11, %v7809_v36  ;;  %v431_v36 = vadd.f32 %v7803_v33, %v7738_v11 }
  0xf4   : > { %v7811_v37 = vpop.f32.mrf.mxu0 }
  0xf6   : > { %v7813_v38 = vpop.f32.mrf.mxu0 }
  0xf8   : > { %v7815_v39 = vpop.f32.mrf.mxu0 }
  0xfa   : > { %v7817_v41 = vpop.f32.mrf.mxu0 }
  0xfc   : > { %v7821_v45 = vpop.f32.mrf.mxu0 }
  0xfd   : > { %v463_v22 = vadd.f32 %v7821_v45, %v7738_v11 }
  0xfe   : > { %v7830_v50 = vpop.f32.mrf.mxu0 }
 0x100   : > { %v7839_v55 = vpop.f32.mrf.mxu0 }
 0x102   : > { %v7850_v60 = vpop.f32.mrf.mxu0 }
 0x104   : > { %v7861_v1 = vpop.f32.mrf.mxu0 }
 0x106   : > { %v470_v6 = vpop.f32.mrf.mxu0 }
 0x108   : > { %v7883_v12 = vpop.f32.mrf.mxu0 }
 0x10a   : > { %v7896_v18 = vpop.f32.mrf.mxu0 }
 0x10c   : > { %v6960_v26 = vpop.f32.mrf.mxu0 }
 0x10e   : > { %v486_v31 = vpop.f32.mrf.mxu0 }
 0x110   : > { %v7939_v45 = vpop.f32.mrf.mxu0 }
 0x112   : > { %v7958_v33 = vpop.f32.mrf.mxu0 }
 0x14f   : > { %v6972_v40 = vpop.f32.mrf.mxu1 }
 0x150   : > { %v569_v53 = vadd.f32 %v6972_v40, %v7768_v21 }
 0x151   : > { %v560_v42 = vpop.f32.mrf.mxu1 }
 0x152   : > { %v561_v43 = vadd.f32 %v560_v42, %v7768_v21 }
 0x153   : > { %v6973_v44 = vpop.f32.mrf.mxu1 }
 0x154   : > { %7039 = vmatpush3.xpose.msk.msra.mxu1 %vm307_vm0, %v561_v43  ;;  %v572_v58 = vadd.f32 %v6973_v44, %v7768_v21  ;;  %v471_v44 = vadd.f32 %v7738_v11, %v470_v6  ;;  %v447_v6 = vadd.f32 %v7811_v37, %v7738_v11 }
 0x155   : > { %v563_v47 = vpop.f32.mrf.mxu1  ;;  %7043 = vmatprep.subr.mxu1 %v8827_v24 }
 0x156   : > { %v564_v48 = vadd.f32 %v563_v47, %v7768_v21 }
 0x157   : > { %v6976_v49 = vpop.f32.mrf.mxu1  ;;  %7041 = vmatmul.mubr.msk.f32.vlgmr.msra.gmra.mxu1 %vm307_vm0, %v391_v46 }
 0x158   : > { %7044 = vmatpush3.xpose.msk.msra.mxu1 %vm307_vm0, %v564_v48  ;;  %7045 = vmatprep.mubr.msk.f32.mxu1 %vm7628_vm1, %v8827_v24  ;;  %v585_v9 = vadd.f32 %v6976_v49, %v7768_v21  ;;  %v479_v49 = vadd.f32 %v7861_v1, %v7738_v11 }
 0x159   : > { %v576_v52 = vpop.f32.mrf.mxu1  ;;  %7048 = vmatprep.subr.mxu1 %v8827_v24 }
 0x15a   : > { %v577_v63 = vadd.f32 %v576_v52, %v7768_v21  ;;  %v434_v52 = vadd.f32 %v7807_v35, %v7738_v11 }
 0x15b   : > { %v6977_v54 = vpop.f32.mrf.mxu1  ;;  %7046 = vmatmul.mubr.msk.f32.vlgmr.msra.gmra.mxu1 %vm307_vm0, %v394_v51 }
 0x15c   : > { %7049 = vmatpush3.xpose.msk.msra.mxu1 %vm307_vm0, %v569_v53  ;;  %7050 = vmatprep.mubr.msk.f32.mxu1 %vm7628_vm1, %v8827_v24  ;;  %v588_v15 = vadd.f32 %v6977_v54, %v7768_v21 }
 0x15d   : > { %v579_v57 = vpop.f32.mrf.mxu1  ;;  %7053 = vmatprep.subr.mxu1 %v8827_v24 }
 0x15e   : > { %v580_v4 = vadd.f32 %v579_v57, %v7768_v21  ;;  %v439_v57 = vadd.f32 %v7738_v11, %v7813_v38 }
 0x15f   : > { %v7844_v59 = vpop.f32.mrf.mxu1  ;;  %7051 = vmatmul.mubr.msk.f32.vlgmr.msra.gmra.mxu1 %vm307_vm0, %v399_v56 }
 0x160   : > { %7054 = vmatpush3.xpose.msk.msra.mxu1 %vm307_vm0, %v572_v58  ;;  %7055 = vmatprep.mubr.msk.f32.mxu1 %vm7628_vm1, %v8827_v24  ;;  %v601_v40 = vadd.f32 %v7844_v59, %v7768_v21  ;;  %v487_v58 = vadd.f32 %v7738_v11, %v486_v31  ;;  %v6964_v59 = vpop.f32.mrf.mxu0 }
 0x161   : > { %v592_v62 = vpop.f32.mrf.mxu1  ;;  %7058 = vmatprep.subr.mxu1 %v8827_v24 }
 0x162   : > { %v593_v23 = vadd.f32 %v592_v62, %v7768_v21 }
 0x163   : > { %v7855_v0 = vpop.f32.mrf.mxu1  ;;  %7056 = vmatmul.mubr.msk.f32.vlgmr.msra.gmra.mxu1 %vm307_vm0, %v402_v61 }
 0x164   : > { %7059 = vmatpush3.xpose.msk.msra.mxu1 %vm307_vm0, %v577_v63  ;;  %7060 = vmatprep.mubr.msk.f32.mxu1 %vm7628_vm1, %v8827_v24  ;;  %v604_v47 = vadd.f32 %v7855_v0, %v7768_v21  ;;  %v442_v63 = vadd.f32 %v7738_v11, %v7817_v41  ;;  %v495_v0 = vadd.f32 %v6960_v26, %v7738_v11 }
 0x165   : > { %v595_v3 = vpop.f32.mrf.mxu1  ;;  %7063 = vmatprep.subr.mxu1 %v8827_v24 }
 0x166   : > { %v596_v29 = vadd.f32 %v595_v3, %v7768_v21 }
 0x167   : > { %v7866_v5 = vpop.f32.mrf.mxu1  ;;  %7061 = vmatmul.mubr.msk.f32.vlgmr.msra.gmra.mxu1 %vm307_vm0, %v407_v2  ;;  %v502_v2 = vpop.f32.mrf.mxu0 }
 0x168   : > { %7064 = vmatpush3.xpose.msk.msra.mxu1 %vm307_vm0, %v580_v4  ;;  %7065 = vmatprep.mubr.msk.f32.mxu1 %vm7628_vm1, %v8827_v24  ;;  %v617_v41 = vadd.f32 %v7866_v5, %v7768_v21 }
 0x169   : > { %v7873_v8 = vpop.f32.mrf.mxu1  ;;  %7068 = vmatprep.subr.mxu1 %v8827_v24 }
 0x16a   : > { %v609_v54 = vadd.f32 %v7873_v8, %v7768_v21  ;;  %v450_v8 = vadd.f32 %v7815_v39, %v7738_v11  ;;  %v455_v39 = vadd.f32 %v7738_v11, %v7830_v50  ;;  %v458_v50 = vadd.f32 %v7738_v11, %v7850_v60 }
 0x16b   : > { %v7877_v10 = vpop.f32.mrf.mxu1  ;;  %7066 = vmatmul.mubr.msk.f32.vlgmr.msra.gmra.mxu1 %vm307_vm0, %v410_v7  ;;  %v503_v7 = vadd.f32 %v7738_v11, %v502_v2 }
 0x16c   : > { %7069 = vmatpush3.xpose.msk.msra.mxu1 %vm307_vm0, %v585_v9  ;;  %7070 = vmatprep.mubr.msk.f32.mxu1 %vm7628_vm1, %v8827_v24  ;;  %v620_v5 = vadd.f32 %v7877_v10, %v7768_v21  ;;  %v511_v9 = vadd.f32 %v6964_v59, %v7738_v11 }
 0x16d   : > { %v7887_v14 = vpop.f32.mrf.mxu1  ;;  %7073 = vmatprep.subr.mxu1 %v8827_v24 }
 0x16e   : > { %v612_v38 = vadd.f32 %v7887_v14, %v7768_v21 }
 0x16f   : > { %v6988_v16 = vpop.f32.mrf.mxu1  ;;  %7071 = vmatmul.mubr.msk.f32.vlgmr.msra.gmra.mxu1 %vm307_vm0, %v415_v13 }
 0x170   : > { %v633_v17 = vadd.f32 %v6988_v16, %v7768_v21  ;;  %7074 = vmatpush3.xpose.msk.msra.mxu1 %vm307_vm0, %v588_v15  ;;  %7075 = vmatprep.mubr.msk.f32.mxu1 %vm7628_vm1, %v8827_v24  ;;  %v466_v15 = vadd.f32 %v7839_v55, %v7738_v11  ;;  %v474_v16 = vadd.f32 %v7738_v11, %v7896_v18 }
 0x171   : > { %v7900_v20 = vpop.f32.mrf.mxu1  ;;  %7078 = vmatprep.subr.mxu1 %v8827_v24 }
 0x172   : > { %7129 = vmatpush3.xpose.msk.msra.mxu0 %vm307_vm0, %v633_v17  ;;  %v625_v10 = vadd.f32 %v7900_v20, %v7768_v21  ;;  %v482_v17 = vadd.f32 %v7883_v12, %v7738_v11  ;;  %v6965_v12 = vpop.f32.mrf.mxu0 }
 0x173   : > { %v7907_v25 = vpop.f32.mrf.mxu1  ;;  %7076 = vmatmul.mubr.msk.f32.vlgmr.msra.gmra.mxu1 %vm307_vm0, %v418_v19  ;;  %7138 = vmatprep.subr.mxu0 %v8827_v24  ;;  %v490_v19 = vadd.f32 %v7738_v11, %v7958_v33 }
 0x174   : > { %7079 = vmatpush3.xpose.msk.msra.mxu1 %vm307_vm0, %v593_v23  ;;  %7080 = vmatprep.mubr.msk.f32.mxu1 %vm7628_vm1, %v8827_v24  ;;  %v636_v14 = vadd.f32 %v7907_v25, %v7768_v21  ;;  %v498_v23 = vadd.f32 %v7939_v45, %v7738_v11  ;;  %v505_v26 = vpop.f32.mrf.mxu0 }
 0x175   : > { %v7916_v28 = vpop.f32.mrf.mxu1  ;;  %7083 = vmatprep.subr.mxu1 %v8827_v24  ;;  %7131 = vmatmul.mubr.msk.f32.vlgmr.msra.gmra.mxu0 %vm307_vm0, %v463_v22 }
 0x176   : > { %7140 = vmatprep.mubr.msk.f32.mxu0 %vm7628_vm1, %v8827_v24  ;;  %v628_v13 = vadd.f32 %v7916_v28, %v7768_v21  ;;  %v506_v28 = vadd.f32 %v7738_v11, %v505_v26  ;;  %v8115_v31 = vpop.f32.mrf.mxu0 }
 0x177   : > { %v6992_v30 = vpop.f32.mrf.mxu1  ;;  %7081 = vmatmul.mubr.msk.f32.vlgmr.msra.gmra.mxu1 %vm307_vm0, %v423_v27 }
 0x178   : > { %7084 = vmatpush3.xpose.msk.msra.mxu1 %vm307_vm0, %v596_v29  ;;  %7085 = vmatprep.mubr.msk.f32.mxu1 %vm7628_vm1, %v8827_v24  ;;  %v649_v48 = vadd.f32 %v6992_v30, %v7768_v21  ;;  %v514_v30 = vadd.f32 %v6965_v12, %v7738_v11 }
 0x179   : > { %v640_v34 = vpop.f32.mrf.mxu1  ;;  %7088 = vmatprep.subr.mxu1 %v8827_v24 }
 0x17a   : > { %v641_v42 = vadd.f32 %v640_v34, %v7768_v21 }
 0x17b   : > { %v7933_v43 = vpop.f32.mrf.mxu1  ;;  %7086 = vmatmul.mubr.msk.f32.vlgmr.msra.gmra.mxu1 %vm307_vm0, %v426_v32  ;;  %v8121_v32 = vpop.f32.mrf.mxu0 }
 0x17c   : > { %7089 = vmatpush3.xpose.msk.msra.mxu1 %vm307_vm0, %v601_v40  ;;  %7139 = vmatpush3.xpose.msk.msra.mxu0 %vm307_vm0, %v641_v42  ;;  %v652_v55 = vadd.f32 %v7933_v43, %v7768_v21 }
 0x17d   : > { %v7943_v46 = vpop.f32.mrf.mxu1  ;;  %7090 = vmatprep.mubr.msk.f32.mxu1 %vm7628_vm1, %v8827_v24  ;;  %7093 = vmatprep.subr.mxu1 %v8827_v24 }
 0x17e   : > { %7148 = vmatprep.subr.mxu0 %v8827_v24  ;;  %v644_v60 = vadd.f32 %v7943_v46, %v7768_v21 }
 0x17f   : > { %v6996_v51 = vpop.f32.mrf.mxu1  ;;  %7091 = vmatmul.mubr.msk.f32.vlgmr.msra.gmra.mxu1 %vm307_vm0, %v431_v36  ;;  %7141 = vmatmul.mubr.msk.f32.vlgmr.msra.gmra.mxu0 %vm307_vm0, %v471_v44 }
 0x180   : > { %7094 = vmatpush3.xpose.msk.msra.mxu1 %vm307_vm0, %v604_v47  ;;  %7149 = vmatpush3.xpose.msk.msra.mxu0 %vm307_vm0, %v649_v48  ;;  %v665_v62 = vadd.f32 %v6996_v51, %v7768_v21 }
 0x181   : > { %v656_v53 = vpop.f32.mrf.mxu1  ;;  %7095 = vmatprep.mubr.msk.f32.mxu1 %vm7628_vm1, %v8827_v24  ;;  %7098 = vmatprep.subr.mxu1 %v8827_v24 }
 0x182   : > { %v657_v56 = vadd.f32 %v656_v53, %v7768_v21  ;;  %7150 = vmatprep.mubr.msk.f32.mxu0 %vm7628_vm1, %v8827_v24  ;;  %7158 = vmatprep.subr.mxu0 %v8827_v24 }
 0x183   : > { %v7973_v35 = vpop.f32.mrf.mxu1  ;;  %7096 = vmatmul.mubr.msk.f32.vlgmr.msra.gmra.mxu1 %vm307_vm0, %v434_v52  ;;  %7151 = vmatmul.mubr.msk.f32.vlgmr.msra.gmra.mxu0 %vm307_vm0, %v479_v49 }
 0x184   : > { %7099 = vmatpush3.xpose.msk.msra.mxu1 %vm307_vm0, %v609_v54  ;;  %7159 = vmatpush3.xpose.msk.msra.mxu0 %vm307_vm0, %v657_v56  ;;  %v668_v22 = vadd.f32 %v7973_v35, %v7768_v21 }
 0x185   : > { %v7980_v61 = vpop.f32.mrf.mxu1  ;;  %7100 = vmatprep.mubr.msk.f32.mxu1 %vm7628_vm1, %v8827_v24  ;;  %7103 = vmatprep.subr.mxu1 %v8827_v24 }
 0x186   : > { %7160 = vmatprep.mubr.msk.f32.mxu0 %vm7628_vm1, %v8827_v24  ;;  %7168 = vmatprep.subr.mxu0 %v8827_v24  ;;  %v660_v18 = vadd.f32 %v7980_v61, %v7768_v21 }
 0x187   : > { %v7000_v1 = vpop.f32.mrf.mxu1  ;;  %7101 = vmatmul.mubr.msk.f32.vlgmr.msra.gmra.mxu1 %vm307_vm0, %v439_v57  ;;  %7161 = vmatmul.mubr.msk.f32.vlgmr.msra.gmra.mxu0 %vm307_vm0, %v487_v58 }
 0x188   : > { %7104 = vmatpush3.xpose.msk.msra.mxu1 %vm307_vm0, %v612_v38  ;;  %7169 = vmatpush3.xpose.msk.msra.mxu0 %vm307_vm0, %v665_v62  ;;  %v681_v37 = vadd.f32 %v7000_v1, %v7768_v21 }
 0x189   : > { %v672_v3 = vpop.f32.mrf.mxu1  ;;  %7105 = vmatprep.mubr.msk.f32.mxu1 %vm7628_vm1, %v8827_v24  ;;  %7108 = vmatprep.subr.mxu1 %v8827_v24 }
 0x18a   : > { %v673_v4 = vadd.f32 %v672_v3, %v7768_v21  ;;  %7170 = vmatprep.mubr.msk.f32.mxu0 %vm7628_vm1, %v8827_v24  ;;  %7178 = vmatprep.subr.mxu0 %v8827_v24 }
 0x18b   : > { %7106 = vmatmul.mubr.msk.f32.vlgmr.msra.gmra.mxu1 %vm307_vm0, %v442_v63  ;;  %7171 = vmatmul.mubr.msk.f32.vlgmr.msra.gmra.mxu0 %vm307_vm0, %v495_v0  ;;  %v7001_v20 = vpop.f32.mrf.mxu1 }
 0x18c   : > { %7109 = vmatpush3.xpose.msk.msra.mxu1 %vm307_vm0, %v617_v41  ;;  %7179 = vmatpush3.xpose.msk.msra.mxu0 %vm307_vm0, %v673_v4  ;;  %v684_v29 = vadd.f32 %v7001_v20, %v7768_v21 }
 0x18d   : > { %7110 = vmatprep.mubr.msk.f32.mxu1 %vm7628_vm1, %v8827_v24  ;;  %7113 = vmatprep.subr.mxu1 %v8827_v24  ;;  %v675_v25 = vpop.f32.mrf.mxu1 }
 0x18e   : > { %7180 = vmatprep.mubr.msk.f32.mxu0 %vm7628_vm1, %v8827_v24  ;;  %7188 = vmatprep.subr.mxu0 %v8827_v24  ;;  %v676_v27 = vadd.f32 %v675_v25, %v7768_v21  ;;  %v8123_v21 = vpop.f32.mrf.mxu0 }
 0x18f   : > { %7111 = vmatmul.mubr.msk.f32.vlgmr.msra.gmra.mxu1 %vm307_vm0, %v447_v6  ;;  %7181 = vmatmul.mubr.msk.f32.vlgmr.msra.gmra.mxu0 %vm307_vm0, %v503_v7 }
 0x190   : > { %7114 = vmatpush3.xpose.msk.msra.mxu1 %vm307_vm0, %v620_v5  ;;  %7189 = vmatpush3.xpose.msk.msra.mxu0 %vm307_vm0, %v681_v37  ;;  %v8125_v11 = vpop.f32.mrf.mxu0 }
 0x191   : > { %7115 = vmatprep.mubr.msk.f32.mxu1 %vm7628_vm1, %v8827_v24  ;;  %7118 = vmatprep.subr.mxu1 %v8827_v24 }
 0x192   : > { %7190 = vmatprep.mubr.msk.f32.mxu0 %vm7628_vm1, %v8827_v24  ;;  %7198 = vmatprep.subr.mxu0 %v8827_v24  ;;  %v8127_v34 = vpop.f32.mrf.mxu0 }
 0x193   : > { %7116 = vmatmul.mubr.msk.f32.vlgmr.msra.gmra.mxu1 %vm307_vm0, %v450_v8  ;;  %7191 = vmatmul.mubr.msk.f32.vlgmr.msra.gmra.mxu0 %vm307_vm0, %v511_v9 }
 0x194   : > { %7119 = vmatpush3.xpose.msk.msra.mxu1 %vm307_vm0, %v625_v10  ;;  %7120 = vmatprep.mubr.msk.f32.mxu1 %vm7628_vm1, %v8827_v24  ;;  %v8129_v40 = vpop.f32.mrf.mxu0 }
 0x195   : > { %7123 = vmatprep.subr.mxu1 %v8827_v24  ;;  %7200 = vmatprep.mubr.msk.f32.mxu0 %vm7628_vm1, %v8827_v24 }
 0x196   : > { %v8131_v42 = vpop.f32.mrf.mxu0 }
 0x197   : > { %7121 = vmatmul.mubr.msk.f32.vlgmr.msra.gmra.mxu1 %vm307_vm0, %v455_v39 }
 0x198   : > { %7124 = vmatpush3.xpose.msk.msra.mxu1 %vm307_vm0, %v628_v13  ;;  %7125 = vmatprep.mubr.msk.f32.mxu1 %vm7628_vm1, %v8827_v24  ;;  %v8133_v43 = vpop.f32.mrf.mxu0 }
 0x199   : > { %7133 = vmatprep.subr.mxu1 %v8827_v24 }
 0x19a   : > { %v8135_v44 = vpop.f32.mrf.mxu0 }
 0x19b   : > { %7126 = vmatmul.mubr.msk.f32.vlgmr.msra.gmra.mxu1 %vm307_vm0, %v458_v50 }
 0x19c   : > { %7134 = vmatpush3.xpose.msk.msra.mxu1 %vm307_vm0, %v636_v14  ;;  %7135 = vmatprep.mubr.msk.f32.mxu1 %vm7628_vm1, %v8827_v24  ;;  %v8137_v45 = vpop.f32.mrf.mxu0 }
 0x19d   : > { %7143 = vmatprep.subr.mxu1 %v8827_v24 }
 0x19e   : > { %v8139_v36 = vpop.f32.mrf.mxu0 }
 0x19f   : > { %7136 = vmatmul.mubr.msk.f32.vlgmr.msra.gmra.mxu1 %vm307_vm0, %v466_v15 }
 0x1a0   : > { %7144 = vmatpush3.xpose.msk.msra.mxu1 %vm307_vm0, %v644_v60  ;;  %7145 = vmatprep.mubr.msk.f32.mxu1 %vm7628_vm1, %v8827_v24  ;;  %v8141_v46 = vpop.f32.mrf.mxu0 }
 0x1a1   : > { %7153 = vmatprep.subr.mxu1 %v8827_v24 }
 0x1a2   : > { %v8143_v47 = vpop.f32.mrf.mxu0 }
 0x1a3   : > { %7146 = vmatmul.mubr.msk.f32.vlgmr.msra.gmra.mxu1 %vm307_vm0, %v474_v16 }
 0x1a4   : > { %7154 = vmatpush3.xpose.msk.msra.mxu1 %vm307_vm0, %v652_v55  ;;  %7155 = vmatprep.mubr.msk.f32.mxu1 %vm7628_vm1, %v8827_v24  ;;  %v8145_v48 = vpop.f32.mrf.mxu0 }
 0x1a5   : > { %7163 = vmatprep.subr.mxu1 %v8827_v24 }
 0x1a6   : > { %v8147_v49 = vpop.f32.mrf.mxu0 }
 0x1a7   : > { %7156 = vmatmul.mubr.msk.f32.vlgmr.msra.gmra.mxu1 %vm307_vm0, %v482_v17 }
 0x1a8   : > { %7164 = vmatpush3.xpose.msk.msra.mxu1 %vm307_vm0, %v660_v18  ;;  %7165 = vmatprep.mubr.msk.f32.mxu1 %vm7628_vm1, %v8827_v24  ;;  %v8149_v51 = vpop.f32.mrf.mxu0 }
 0x1a9   : > { %7173 = vmatprep.subr.mxu1 %v8827_v24 }
 0x1aa   : > { %v8151_v33 = vpop.f32.mrf.mxu0 }
 0x1ab   : > { %7166 = vmatmul.mubr.msk.f32.vlgmr.msra.gmra.mxu1 %vm307_vm0, %v490_v19 }
 0x1ac   : > { %7174 = vmatpush3.xpose.msk.msra.mxu1 %vm307_vm0, %v668_v22  ;;  %7175 = vmatprep.mubr.msk.f32.mxu1 %vm7628_vm1, %v8827_v24  ;;  %v8153_v52 = vpop.f32.mrf.mxu0 }
 0x1ad   : > { %7183 = vmatprep.subr.mxu1 %v8827_v24 }
 0x1ae   : > { %v8155_v53 = vpop.f32.mrf.mxu0 }
 0x1af   : > { %7176 = vmatmul.mubr.msk.f32.vlgmr.msra.gmra.mxu1 %vm307_vm0, %v498_v23  ;;  %8834 = vst [vmem:[#allocation5_spill] sm:$0xff] %v8155_v53 }
 0x1b0   : > { %7184 = vmatpush3.xpose.msk.msra.mxu1 %vm307_vm0, %v676_v27  ;;  %7185 = vmatprep.mubr.msk.f32.mxu1 %vm7628_vm1, %v8827_v24  ;;  %v8157_v54 = vpop.f32.mrf.mxu0 }
 0x1b1   : > { %7193 = vmatprep.subr.mxu1 %v8827_v24 }
 0x1b2   : > { %v8159_v56 = vpop.f32.mrf.mxu0 }
 0x1b3   : > { %7186 = vmatmul.mubr.msk.f32.vlgmr.msra.gmra.mxu1 %vm307_vm0, %v506_v28  ;;  %8835 = vst [vmem:[#allocation6_spill] sm:$0xff] %v8159_v56 }
 0x1b4   : > { %7194 = vmatpush3.xpose.msk.msra.mxu1 %vm307_vm0, %v684_v29  ;;  %7195 = vmatprep.mubr.msk.f32.mxu1 %vm7628_vm1, %v8827_v24  ;;  %v8161_v57 = vpop.f32.mrf.mxu0 }
 0x1b5   : > { %7203 = vmatprep.subr.mxu1 %v8827_v24  ;;  %8836 = vst [vmem:[#allocation7_spill] sm:$0xff] %v8161_v57 }
 0x1b6   : > { %v8163_v35 = vpop.f32.mrf.mxu0 }
 0x1b7   : > { %7196 = vmatmul.mubr.msk.f32.vlgmr.msra.gmra.mxu1 %vm307_vm0, %v514_v30  ;;  %8837 = vst [vmem:[#allocation8_spill] sm:$0xff] %v8163_v35 }
 0x1b8   : > { %7205 = vmatprep.mubr.msk.f32.mxu1 %vm7628_vm1, %v8827_v24  ;;  %v8165_v58 = vpop.f32.mrf.mxu0 }
 0x1b9   : > { %8838 = vst [vmem:[#allocation9_spill] sm:$0xff] %v8165_v58 }
 0x1ba   : > { %v8167_v59 = vpop.f32.mrf.mxu0 }
 0x1bb   : > { %8839 = vst [vmem:[#allocation10_spill] sm:$0xff] %v8167_v59 }
 0x1bc   : > { %v8171_v63 = vpop.f32.mrf.mxu0 }
 0x1bd   : > { %8840 = vst [vmem:[#allocation11_spill] sm:$0xff] %v8171_v63 }
 0x1be   : > { %v8177_v41 = vpop.f32.mrf.mxu0 }
 0x1bf   : > { %8841 = vst [vmem:[#allocation12_spill] sm:$0xff] %v8177_v41 }
 0x1c0   : > { %v8183_v37 = vpop.f32.mrf.mxu0 }
 0x1c1   : > { %8842 = vst [vmem:[#allocation13_spill] sm:$0xff] %v8183_v37 }
 0x1c2   : > { %v8189_v13 = vpop.f32.mrf.mxu0 }
 0x1c3   : > { %8843 = vst [vmem:[#allocation14_spill] sm:$0xff] %v8189_v13 }
 0x1c4   : > { %v8195_v16 = vpop.f32.mrf.mxu0 }
 0x1c5   : > { %8844 = vst [vmem:[#allocation15_spill] sm:$0xff] %v8195_v16 }
 0x1c6   : > { %v8201_v20 = vpop.f32.mrf.mxu0 }
 0x1c7   : > { %8845 = vst [vmem:[#allocation16_spill] sm:$0xff] %v8201_v20 }
 0x1c8   : > { %v8207_v26 = vpop.f32.mrf.mxu0 }
 0x1c9   : > { %8846 = vst [vmem:[#allocation17_spill] sm:$0xff] %v8207_v26 }
 0x217   : > { %v929_v61 = vpop.f32.mrf.mxu1 }
 0x218   : > { %v8169_v38 = vmul.f32 0.17677669, %v929_v61 }
 0x219   : > { %v7042_v62 = vpop.f32.mrf.mxu1 }
 0x21a   : > { %v3322_v0 = vsel %vm3321_vm2, %v8169_v38, -inf }
 0x21b   : > { %3323 = vmax.xlane.f32.xlu1 %v3322_v0  ;;  %v1005_v1 = vpop.f32.mrf.mxu1 }
 0x21c   : > { %v8175_v2 = vmul.f32 0.17677669, %v1005_v1 }
 0x21d   : > { %v7047_v3 = vpop.f32.mrf.mxu1 }
 0x21e   : > { %v3325_v4 = vsel %vm3321_vm2, %v8175_v2, -inf }
 0x21f   : > { %3326 = vmax.xlane.f32.xlu0 %v3325_v4  ;;  %v1081_v6 = vpop.f32.mrf.mxu1 }
 0x220   : > { %v8181_v7 = vmul.f32 0.17677669, %v1081_v6 }
 0x221   : > { %v7052_v5 = vpop.f32.mrf.mxu1 }
 0x222   : > { %v3328_v8 = vsel %vm3321_vm2, %v8181_v7, -inf }
 0x223   : > { %3329 = vmax.xlane.f32.xlu0 %v3328_v8  ;;  %v1157_v9 = vpop.f32.mrf.mxu1 }
 0x224   : > { %v8187_v10 = vmul.f32 0.17677669, %v1157_v9 }
 0x225   : > { %v7057_v39 = vpop.f32.mrf.mxu1 }
 0x226   : > { %v3331_v50 = vsel %vm3321_vm2, %v8187_v10, -inf }
 0x227   : > { %3332 = vmax.xlane.f32.xlu1 %v3331_v50  ;;  %v1233_v14 = vpop.f32.mrf.mxu1 }
 0x228   : > { %v8193_v15 = vmul.f32 0.17677669, %v1233_v14 }
 0x229   : > { %v7062_v60 = vpop.f32.mrf.mxu1 }
 0x22a   : > { %v3334_v55 = vsel %vm3321_vm2, %v8193_v15, -inf }
 0x22b   : > { %3335 = vmax.xlane.f32.xlu0 %v3334_v55  ;;  %v1309_v17 = vpop.f32.mrf.mxu1 }
 0x22c   : > { %v8199_v18 = vmul.f32 0.17677669, %v1309_v17 }
 0x22d   : > { %v7067_v19 = vpop.f32.mrf.mxu1 }
 0x22e   : > { %v3337_v12 = vsel %vm3321_vm2, %v8199_v18, -inf }
 0x22f   : > { %3338 = vmax.xlane.f32.xlu1 %v3337_v12  ;;  %v1385_v22 = vpop.f32.mrf.mxu1 }
 0x230   : > { %v8205_v23 = vmul.f32 0.17677669, %v1385_v22 }
 0x231   : > { %v7072_v25 = vpop.f32.mrf.mxu1 }
 0x232   : > { %v3340_v27 = vsel %vm3321_vm2, %v8205_v23, -inf }
 0x233   : > { %3341 = vmax.xlane.f32.xlu0 %v3340_v27  ;;  %v1461_v28 = vpop.f32.mrf.mxu1 }
 0x234   : > { %v8211_v29 = vmul.f32 0.17677669, %v1461_v28 }
 0x235   : > { %v7077_v30 = vpop.f32.mrf.mxu1  ;;  %v2297_v61 = vpop.f32.mrf.mxu0 }
 0x236   : > { %v3343_v62 = vsel %vm3321_vm2, %v8211_v29, -inf }
 0x237   : > { %3344 = vmax.xlane.f32.xlu1 %v3343_v62  ;;  %v1537_v0 = vpop.f32.mrf.mxu1  ;;  %v7132_v1 = vpop.f32.mrf.mxu0 }
 0x238   : > { %v8215_v3 = vmul.f32 0.17677669, %v1537_v0 }
 0x239   : > { %v7082_v4 = vpop.f32.mrf.mxu1 }
 0x23a   : > { %v3346_v6 = vsel %vm3321_vm2, %v8215_v3, -inf }
 0x23b   : > { %3347 = vmax.xlane.f32.xlu0 %v3346_v6  ;;  %v1613_v5 = vpop.f32.mrf.mxu1 }
 0x23c   : > { %v8219_v8 = vmul.f32 0.17677669, %v1613_v5 }
 0x23d   : > { %v7087_v9 = vpop.f32.mrf.mxu1 }
 0x23e   : > { %v3349_v39 = vsel %vm3321_vm2, %v8219_v8, -inf }
 0x23f   : > { %3350 = vmax.xlane.f32.xlu1 %v3349_v39  ;;  %v1689_v50 = vpop.f32.mrf.mxu1  ;;  %v2449_v14 = vpop.f32.mrf.mxu0 }
 0x240   : > { %v8223_v60 = vmul.f32 0.17677669, %v1689_v50 }
 0x241   : > { %v7092_v55 = vpop.f32.mrf.mxu1  ;;  %v7142_v17 = vpop.f32.mrf.mxu0 }
 0x242   : > { %v3352_v19 = vsel %vm3321_vm2, %v8223_v60, -inf }
 0x243   : > { %3353 = vmax.xlane.f32.xlu0 %v3352_v19  ;;  %v1765_v12 = vpop.f32.mrf.mxu1  ;;  %v2601_v22 = vpop.f32.mrf.mxu0 }
 0x244   : > { %v8227_v25 = vmul.f32 0.17677669, %v1765_v12 }
 0x245   : > { %v7097_v27 = vpop.f32.mrf.mxu1  ;;  %v7152_v28 = vpop.f32.mrf.mxu0 }
 0x246   : > { %v3355_v30 = vsel %vm3321_vm2, %v8227_v25, -inf }
 0x247   : > { %3356 = vmax.xlane.f32.xlu1 %v3355_v30  ;;  %v1841_v62 = vpop.f32.mrf.mxu1  ;;  %v2753_v0 = vpop.f32.mrf.mxu0 }
 0x248   : > { %v8231_v1 = vmul.f32 0.17677669, %v1841_v62  ;;  %v8271_v37 = vmul.f32 0.17677669, %v2753_v0 }
 0x249   : > { %v7102_v4 = vpop.f32.mrf.mxu1  ;;  %v7162_v6 = vpop.f32.mrf.mxu0 }
 0x24a   : > { %v3358_v5 = vsel %vm3321_vm2, %v8231_v1, -inf }
 0x24b   : > { %3359 = vmax.xlane.f32.xlu0 %v3358_v5  ;;  %v1917_v9 = vpop.f32.mrf.mxu1  ;;  %v2905_v39 = vpop.f32.mrf.mxu0 }
 0x24c   : > { %v8235_v50 = vmul.f32 0.17677669, %v1917_v9  ;;  %v8279_v35 = vmul.f32 0.17677669, %v2905_v39 }
 0x24d   : > { %v7107_v55 = vpop.f32.mrf.mxu1  ;;  %v7172_v17 = vpop.f32.mrf.mxu0 }
 0x24e   : > { %v3361_v19 = vsel %vm3321_vm2, %v8235_v50, -inf }
 0x24f   : > { %3362 = vmax.xlane.f32.xlu1 %v3361_v19  ;;  %v1993_v12 = vpop.f32.mrf.mxu1  ;;  %v3057_v27 = vpop.f32.mrf.mxu0 }
 0x250   : > { %v8239_v28 = vmul.f32 0.17677669, %v1993_v12  ;;  %v8249_v12 = vmul.f32 0.17677669, %v2297_v61  ;;  %v8287_v13 = vmul.f32 0.17677669, %v3057_v27 }
 0x251   : > { %v7112_v30 = vpop.f32.mrf.mxu1  ;;  %v7182_v62 = vpop.f32.mrf.mxu0 }
 0x252   : > { %v3364_v4 = vsel %vm3321_vm2, %v8239_v28, -inf }
 0x253   : > { %3365 = vmax.xlane.f32.xlu0 %v3364_v4  ;;  %v2069_v6 = vpop.f32.mrf.mxu1  ;;  %v3209_v5 = vpop.f32.mrf.mxu0 }
 0x254   : > { %v8243_v9 = vmul.f32 0.17677669, %v2069_v6  ;;  %v8255_v6 = vmul.f32 0.17677669, %v2449_v14  ;;  %v8295_v58 = vmul.f32 0.17677669, %v3209_v5 }
 0x255   : > { %v7117_v55 = vpop.f32.mrf.mxu1  ;;  %v7192_v17 = vpop.f32.mrf.mxu0 }
 0x256   : > { %v3367_v24 = vsel %vm3321_vm2, %v8243_v9, -inf  ;;  %v3376_v55 = vsel %vm3321_vm2, %v8249_v12, -inf }
 0x257   : > { %3368 = vmax.xlane.f32.xlu1 %v3367_v24  ;;  %v2145_v19 = vpop.f32.mrf.mxu1 }
 0x258   : > { %v8247_v20 = vmul.f32 0.17677669, %v2145_v19 }
 0x259   : > { %v7122_v30 = vpop.f32.mrf.mxu1 }
 0x25a   : > { %v3370_v62 = vsel %vm3321_vm2, %v8247_v20, -inf  ;;  %v8263_v30 = vmul.f32 0.17677669, %v2601_v22 }
 0x25b   : > { %3371 = vmax.xlane.f32.xlu0 %v3370_v62  ;;  %v2221_v4 = vpop.f32.mrf.mxu1  ;;  %v3382_v62 = vsel %vm3321_vm2, %v8255_v6, -inf }
 0x25c   : > { %v8253_v26 = vmul.f32 0.17677669, %v2221_v4 }
 0x25d   : > { %v7127_v17 = vpop.f32.mrf.mxu1 }
 0x25e   : > { %v3373_v24 = vsel %vm3321_vm2, %v8253_v26, -inf }
 0x25f   : > { %3377 = vmax.xlane.f32.xlu0 %v3376_v55  ;;  %3374 = vmax.xlane.f32.xlu1 %v3373_v24  ;;  %v2373_v61 = vpop.f32.mrf.mxu1  ;;  %v3388_v55 = vsel %vm3321_vm2, %v8263_v30, -inf }
 0x260   : > { %v8261_v19 = vmul.f32 0.17677669, %v2373_v61 }
 0x261   : > { %v7137_v4 = vpop.f32.mrf.mxu1 }
 0x262   : > { %v3379_v14 = vsel %vm3321_vm2, %v8261_v19, -inf }
 0x263   : > { %3383 = vmax.xlane.f32.xlu0 %v3382_v62  ;;  %3380 = vmax.xlane.f32.xlu1 %v3379_v14  ;;  %v2525_v17 = vpop.f32.mrf.mxu1  ;;  %v3394_v62 = vsel %vm3321_vm2, %v8271_v37, -inf }
 0x264   : > { %v8269_v41 = vmul.f32 0.17677669, %v2525_v17 }
 0x265   : > { %v7147_v24 = vpop.f32.mrf.mxu1 }
 0x266   : > { %v3385_v22 = vsel %vm3321_vm2, %v8269_v41, -inf }
 0x267   : > { %3389 = vmax.xlane.f32.xlu0 %v3388_v55  ;;  %3386 = vmax.xlane.f32.xlu1 %v3385_v22  ;;  %v2677_v61 = vpop.f32.mrf.mxu1  ;;  %v3400_v55 = vsel %vm3321_vm2, %v8279_v35, -inf }
 0x268   : > { %v8277_v4 = vmul.f32 0.17677669, %v2677_v61 }
 0x269   : > { %v7157_v14 = vpop.f32.mrf.mxu1 }
 0x26a   : > { %v3391_v0 = vsel %vm3321_vm2, %v8277_v4, -inf }
 0x26b   : > { %3395 = vmax.xlane.f32.xlu0 %v3394_v62  ;;  %3392 = vmax.xlane.f32.xlu1 %v3391_v0  ;;  %v2829_v17 = vpop.f32.mrf.mxu1  ;;  %v3406_v62 = vsel %vm3321_vm2, %v8287_v13, -inf }
 0x26c   : > { %v8285_v24 = vmul.f32 0.17677669, %v2829_v17 }
 0x26d   : > { %v7167_v22 = vpop.f32.mrf.mxu1 }
 0x26e   : > { %v3397_v39 = vsel %vm3321_vm2, %v8285_v24, -inf }
 0x26f   : > { %3401 = vmax.xlane.f32.xlu0 %v3400_v55  ;;  %3398 = vmax.xlane.f32.xlu1 %v3397_v39  ;;  %v2981_v61 = vpop.f32.mrf.mxu1  ;;  %v3412_v55 = vsel %vm3321_vm2, %v8295_v58, -inf }
 0x270   : > { %v8293_v14 = vmul.f32 0.17677669, %v2981_v61 }
 0x271   : > { %v7177_v0 = vpop.f32.mrf.mxu1 }
 0x272   : > { %v3403_v27 = vsel %vm3321_vm2, %v8293_v14, -inf }
 0x273   : > { %3407 = vmax.xlane.f32.xlu0 %v3406_v62  ;;  %3404 = vmax.xlane.f32.xlu1 %v3403_v27  ;;  %v3133_v17 = vpop.f32.mrf.mxu1 }
 0x274   : > { %v8301_v22 = vmul.f32 0.17677669, %v3133_v17 }
 0x275   : > { %v7187_v39 = vpop.f32.mrf.mxu1 }
 0x276   : > { %v3409_v5 = vsel %vm3321_vm2, %v8301_v22, -inf }
 0x277   : > { %3413 = vmax.xlane.f32.xlu0 %v3412_v55  ;;  %3410 = vmax.xlane.f32.xlu1 %v3409_v5  ;;  %v3285_v61 = vpop.f32.mrf.mxu1 }
 0x278   : > { %v8307_v16 = vmul.f32 0.17677669, %v3285_v61 }
 0x279   : > { %v7197_v0 = vpop.f32.mrf.mxu1 }
 0x27a   : > { %v3415_v62 = vsel %vm3321_vm2, %v8307_v16, -inf }
 0x27b   : > { %3416 = vmax.xlane.f32.xlu1 %v3415_v62 }
 0x2a4   : > { %v3324_v27 = vpop.xlane.xlu1 %3323 }
 0x2a5   : > { %v3418_v17 = vsub.f32 %v8169_v38, %v3324_v27 }
 0x2a7   : > { %v3450_v53 = vmul.f32 1.442695, %v3418_v17 }
 0x2a8   : > { %v3327_v59 = vpop.xlane.xlu0 %3326 }
 0x2a9   : > { %7434 = vpow2.f32 %v3450_v53  ;;  %v3419_v39 = vsub.f32 %v8175_v2, %v3327_v59 }
 0x2ab   : > { %v3452_v63 = vmul.f32 1.442695, %v3419_v39 }
 0x2ac   : > { %v3330_v56 = vpop.xlane.xlu0 %3329 }
 0x2ad   : > { %7436 = vpow2.f32 %v3452_v63  ;;  %v3420_v55 = vsub.f32 %v8181_v7, %v3330_v56 }
 0x2af   : > { %v3454_v5 = vmul.f32 1.442695, %v3420_v55 }
 0x2b0   : > { %v3333_v61 = vpop.xlane.xlu1 %3332 }
 0x2b1   : > { %7438 = vpow2.f32 %v3454_v5  ;;  %v3421_v0 = vsub.f32 %v8187_v10, %v3333_v61 }
 0x2b3   : > { %v3456_v57 = vmul.f32 1.442695, %v3421_v0 }
 0x2b4   : > { %v3336_v62 = vpop.xlane.xlu0 %3335 }
 0x2b5   : > { %7440 = vpow2.f32 %v3456_v57  ;;  %v3422_v38 = vsub.f32 %v8193_v15, %v3336_v62 }
 0x2b6   : > { %v8316_v27 = vpop.eup %7434 }
 0x2b7   : > { %v3458_v53 = vmul.f32 1.442695, %v3422_v38  ;;  %v3514_v59 = vsel %vm3321_vm2, %v8316_v27, 0.0 }
 0x2b8   : > { %v3339_v2 = vpop.xlane.xlu1 %3338  ;;  %3515 = vadd.xlane.f32.xlu0 %v3514_v59 }
 0x2b9   : > { %7442 = vpow2.f32 %v3458_v53  ;;  %v3423_v56 = vsub.f32 %v8199_v18, %v3339_v2 }
 0x2ba   : > { %v8321_v63 = vpop.eup %7436 }
 0x2bb   : > { %v3460_v7 = vmul.f32 1.442695, %v3423_v56  ;;  %v3517_v10 = vsel %vm3321_vm2, %v8321_v63, 0.0 }
 0x2bc   : > { %v3342_v57 = vpop.xlane.xlu0 %3341  ;;  %3518 = vadd.xlane.f32.xlu1 %v3517_v10 }
 0x2bd   : > { %7444 = vpow2.f32 %v3460_v7  ;;  %v3424_v15 = vsub.f32 %v8205_v23, %v3342_v57 }
 0x2be   : > { %v8326_v17 = vpop.eup %7438 }
 0x2bf   : > { %v3462_v39 = vmul.f32 1.442695, %v3424_v15  ;;  %v3520_v55 = vsel %vm3321_vm2, %v8326_v17, 0.0 }
 0x2c0   : > { %v3345_v5 = vpop.xlane.xlu1 %3344  ;;  %3521 = vadd.xlane.f32.xlu0 %v3520_v55 }
 0x2c1   : > { %7446 = vpow2.f32 %v3462_v39  ;;  %v3425_v18 = vsub.f32 %v8211_v29, %v3345_v5 }
 0x2c2   : > { %v8331_v61 = vpop.eup %7440 }
 0x2c3   : > { %v3464_v0 = vmul.f32 1.442695, %v3425_v18  ;;  %v3523_v62 = vsel %vm3321_vm2, %v8331_v61, 0.0 }
 0x2c4   : > { %v3348_v38 = vpop.xlane.xlu0 %3347  ;;  %3524 = vadd.xlane.f32.xlu1 %v3523_v62 }
 0x2c5   : > { %7448 = vpow2.f32 %v3464_v0  ;;  %v3426_v23 = vsub.f32 %v8215_v3, %v3348_v38 }
 0x2c6   : > { %v8336_v53 = vpop.eup %7442 }
 0x2c7   : > { %v3466_v59 = vmul.f32 1.442695, %v3426_v23  ;;  %v3526_v2 = vsel %vm3321_vm2, %v8336_v53, 0.0 }
 0x2c8   : > { %v3351_v56 = vpop.xlane.xlu1 %3350  ;;  %3527 = vadd.xlane.f32.xlu0 %v3526_v2 }
 0x2c9   : > { %7450 = vpow2.f32 %v3466_v59  ;;  %v3427_v29 = vsub.f32 %v8219_v8, %v3351_v56 }
 0x2ca   : > { %v8341_v7 = vpop.eup %7444 }
 0x2cb   : > { %v3468_v10 = vmul.f32 1.442695, %v3427_v29  ;;  %v3529_v57 = vsel %vm3321_vm2, %v8341_v7, 0.0 }
 0x2cc   : > { %v3354_v15 = vpop.xlane.xlu0 %3353  ;;  %3530 = vadd.xlane.f32.xlu1 %v3529_v57 }
 0x2cd   : > { %7452 = vpow2.f32 %v3468_v10  ;;  %v3428_v3 = vsub.f32 %v8223_v60, %v3354_v15 }
 0x2ce   : > { %v8346_v39 = vpop.eup %7446 }
 0x2cf   : > { %v3470_v55 = vmul.f32 1.442695, %v3428_v3  ;;  %v3532_v5 = vsel %vm3321_vm2, %v8346_v39, 0.0 }
 0x2d0   : > { %v3357_v18 = vpop.xlane.xlu1 %3356  ;;  %3533 = vadd.xlane.f32.xlu0 %v3532_v5 }
 0x2d1   : > { %7454 = vpow2.f32 %v3470_v55  ;;  %v3429_v8 = vsub.f32 %v8227_v25, %v3357_v18 }
 0x2d2   : > { %v8351_v0 = vpop.eup %7448 }
 0x2d3   : > { %v3472_v62 = vmul.f32 1.442695, %v3429_v8  ;;  %v3535_v38 = vsel %vm3321_vm2, %v8351_v0, 0.0 }
 0x2d4   : > { %v3360_v23 = vpop.xlane.xlu0 %3359  ;;  %3536 = vadd.xlane.f32.xlu1 %v3535_v38 }
 0x2d5   : > { %7456 = vpow2.f32 %v3472_v62  ;;  %v3430_v60 = vsub.f32 %v8231_v1, %v3360_v23 }
 0x2d6   : > { %v8356_v59 = vpop.eup %7450 }
 0x2d7   : > { %v3474_v2 = vmul.f32 1.442695, %v3430_v60  ;;  %v3538_v56 = vsel %vm3321_vm2, %v8356_v59, 0.0 }
 0x2d8   : > { %v3363_v29 = vpop.xlane.xlu1 %3362  ;;  %3539 = vadd.xlane.f32.xlu0 %v3538_v56 }
 0x2d9   : > { %7458 = vpow2.f32 %v3474_v2  ;;  %v3431_v25 = vsub.f32 %v8235_v50, %v3363_v29 }
 0x2da   : > { %v8361_v10 = vpop.eup %7452 }
 0x2db   : > { %v3476_v57 = vmul.f32 1.442695, %v3431_v25  ;;  %v3541_v15 = vsel %vm3321_vm2, %v8361_v10, 0.0 }
 0x2dc   : > { %v3366_v3 = vpop.xlane.xlu0 %3365  ;;  %3542 = vadd.xlane.f32.xlu1 %v3541_v15 }
 0x2dd   : > { %7460 = vpow2.f32 %v3476_v57  ;;  %v3432_v1 = vsub.f32 %v8239_v28, %v3366_v3 }
 0x2de   : > { %v8366_v55 = vpop.eup %7454 }
 0x2df   : > { %v3478_v5 = vmul.f32 1.442695, %v3432_v1  ;;  %v3544_v18 = vsel %vm3321_vm2, %v8366_v55, 0.0 }
 0x2e0   : > { %v3369_v8 = vpop.xlane.xlu1 %3368  ;;  %3545 = vadd.xlane.f32.xlu0 %v3544_v18 }
 0x2e1   : > { %7462 = vpow2.f32 %v3478_v5  ;;  %v3433_v50 = vsub.f32 %v8243_v9, %v3369_v8 }
 0x2e2   : > { %v8371_v62 = vpop.eup %7456 }
 0x2e3   : > { %v3480_v38 = vmul.f32 1.442695, %v3433_v50  ;;  %v3547_v23 = vsel %vm3321_vm2, %v8371_v62, 0.0 }
 0x2e4   : > { %v3372_v60 = vpop.xlane.xlu0 %3371  ;;  %3548 = vadd.xlane.f32.xlu1 %v3547_v23 }
 0x2e5   : > { %7464 = vpow2.f32 %v3480_v38  ;;  %v3434_v28 = vsub.f32 %v8247_v20, %v3372_v60 }
 0x2e6   : > { %v8376_v2 = vpop.eup %7458 }
 0x2e7   : > { %v3482_v56 = vmul.f32 1.442695, %v3434_v28  ;;  %v3550_v29 = vsel %vm3321_vm2, %v8376_v2, 0.0 }
 0x2e8   : > { %3551 = vadd.xlane.f32.xlu0 %v3550_v29  ;;  %v3378_v25 = vpop.xlane.xlu0 %3377  ;;  %v3375_v9 = vpop.xlane.xlu1 %3374 }
 0x2e9   : > { %7466 = vpow2.f32 %v3482_v56  ;;  %v3436_v57 = vsub.f32 %v8249_v12, %v3378_v25 }
 0x2ea   : > { %v8381_v15 = vpop.eup %7460 }
 0x2eb   : > { %v3486_v3 = vmul.f32 1.442695, %v3436_v57  ;;  %v3553_v1 = vsel %vm3321_vm2, %v8381_v15, 0.0 }
 0x2ec   : > { %3554 = vadd.xlane.f32.xlu0 %v3553_v1  ;;  %v3384_v20 = vpop.xlane.xlu0 %3383  ;;  %v3381_v5 = vpop.xlane.xlu1 %3380  ;;  %v7562_v1 = vld [vmem:[%s8825_s2] ss:$0 sm:$0xff] }
 0x2ed   : > { %7468 = vpow2.f32 %v3486_v3  ;;  %v3438_v18 = vsub.f32 %v8255_v6, %v3384_v20  ;;  %v3437_v56 = vsub.f32 %v8261_v19, %v3381_v5 }
 0x2ee   : > { %v8386_v8 = vpop.eup %7462 }
 0x2ef   : > { %v3490_v50 = vmul.f32 1.442695, %v3438_v18  ;;  %v3556_v38 = vsel %vm3321_vm2, %v8386_v8, 0.0  ;;  %v3488_v20 = vmul.f32 1.442695, %v3437_v56 }
 0x2f0   : > { %3557 = vadd.xlane.f32.xlu0 %v3556_v38  ;;  %v3390_v12 = vpop.xlane.xlu0 %3389  ;;  %v3387_v23 = vpop.xlane.xlu1 %3386 }
 0x2f1   : > { %7470 = vpow2.f32 %v3490_v50  ;;  %v3440_v60 = vsub.f32 %v8263_v30, %v3390_v12  ;;  %v3439_v19 = vsub.f32 %v8269_v41, %v3387_v23 }
 0x2f2   : > { %v8391_v28 = vpop.eup %7464 }
 0x2f3   : > { %v3494_v29 = vmul.f32 1.442695, %v3440_v60  ;;  %v3559_v6 = vsel %vm3321_vm2, %v8391_v28, 0.0 }
 0x2f4   : > { %3560 = vadd.xlane.f32.xlu0 %v3559_v6  ;;  %v3396_v25 = vpop.xlane.xlu0 %3395  ;;  %v3393_v57 = vpop.xlane.xlu1 %3392 }
 0x2f5   : > { %7472 = vpow2.f32 %v3494_v29  ;;  %v3442_v3 = vsub.f32 %v8271_v37, %v3396_v25  ;;  %693 = vrot.lane.b32.xlu1 %v7562_v1, %s7626_s9  ;;  %v3492_v37 = vmul.f32 1.442695, %v3439_v19  ;;  %v3441_v12 = vsub.f32 %v8277_v4, %v3393_v57 }
 0x2f6   : > { %v8401_v30 = vpop.eup %7466 }
 0x2f7   : > { %v3498_v5 = vmul.f32 1.442695, %v3442_v3  ;;  %v3562_v18 = vsel %vm3321_vm2, %v8401_v30, 0.0  ;;  %v3496_v23 = vmul.f32 1.442695, %v3441_v12  ;;  %v3435_v3 = vsub.f32 %v8253_v26, %v3375_v9 }
 0x2f8   : > { %3563 = vadd.xlane.f32.xlu0 %v3562_v18  ;;  %v3399_v50 = vpop.xlane.xlu1 %3398  ;;  %v3402_v29 = vpop.xlane.xlu0 %3401 }
 0x2f9   : > { %7474 = vpow2.f32 %v3498_v5  ;;  %v3443_v6 = vsub.f32 %v8285_v24, %v3399_v50  ;;  %v3444_v57 = vsub.f32 %v8279_v35, %v3402_v29  ;;  %v3484_v18 = vmul.f32 1.442695, %v3435_v3 }
 0x2fa   : > { %v8406_v38 = vpop.eup %7468  ;;  %7476 = vpow2.f32 %v3488_v20 }
 0x2fb   : > { %v3568_v60 = vsel %vm3321_vm2, %v8406_v38, 0.0  ;;  %7478 = vpow2.f32 %v3492_v37  ;;  %v3500_v20 = vmul.f32 1.442695, %v3443_v6  ;;  %v3502_v37 = vmul.f32 1.442695, %v3444_v57 }
 0x2fc   : > { %3569 = vadd.xlane.f32.xlu0 %v3568_v60  ;;  %v3405_v56 = vpop.xlane.xlu1 %3404  ;;  %v3408_v4 = vpop.xlane.xlu0 %3407  ;;  %7480 = vpow2.f32 %v3496_v23 }
 0x2fd   : > { %v3445_v24 = vsub.f32 %v8293_v14, %v3405_v56  ;;  %7482 = vpow2.f32 %v3500_v20  ;;  %v3446_v26 = vsub.f32 %v8287_v13, %v3408_v4 }
 0x2fe   : > { %v8411_v41 = vpop.eup %7470  ;;  %7484 = vpow2.f32 %v3484_v18 }
 0x2ff   : > { %v3574_v25 = vsel %vm3321_vm2, %v8411_v41, 0.0  ;;  %v3504_v35 = vmul.f32 1.442695, %v3445_v24  ;;  %7486 = vpow2.f32 %v3502_v37  ;;  %v3506_v14 = vmul.f32 1.442695, %v3446_v26 }
 0x300   : > { %3575 = vadd.xlane.f32.xlu0 %v3574_v25  ;;  %v3411_v19 = vpop.xlane.xlu1 %3410  ;;  %v3414_v60 = vpop.xlane.xlu0 %3413 }
 0x301   : > { %v3447_v29 = vsub.f32 %v8301_v22, %v3411_v19  ;;  %v3448_v56 = vsub.f32 %v8295_v58, %v3414_v60  ;;  %7488 = vpow2.f32 %v3504_v35 }
 0x302   : > { %v8417_v1 = vpop.eup %7472  ;;  %7490 = vpow2.f32 %v3506_v14 }
 0x303   : > { %v3580_v5 = vsel %vm3321_vm2, %v8417_v1, 0.0  ;;  %v3508_v25 = vmul.f32 1.442695, %v3447_v29  ;;  %v3510_v4 = vmul.f32 1.442695, %v3448_v56 }
 0x304   : > { %3581 = vadd.xlane.f32.xlu0 %v3580_v5  ;;  %v3417_v23 = vpop.xlane.xlu1 %3416 }
 0x305   : > { %v3449_v3 = vsub.f32 %v8307_v16, %v3417_v23  ;;  %7492 = vpow2.f32 %v3508_v25 }
 0x306   : > { %v8423_v50 = vpop.eup %7474  ;;  %7494 = vpow2.f32 %v3510_v4  ;;  %v6732_v4 = vld [vmem:[%s8824_s1] sm:$0xff]  }
 0x307   : > { %v3586_v9 = vsel %vm3321_vm2, %v8423_v50, 0.0  ;;  %v8428_v12 = vpop.eup %7476  ;;  %v3512_v20 = vmul.f32 1.442695, %v3449_v3  ;;  %v6739_v3 = vld [vmem:[%s8824_s1 + $0x8] sm:$0xff]  }
 0x308   : > { %3587 = vadd.xlane.f32.xlu0 %v3586_v9  ;;  %v3571_v6 = vsel %vm3321_vm2, %v8428_v12, 0.0  ;;  %v8434_v13 = vpop.eup %7478 }
 0x309   : > { %v3577_v22 = vsel %vm3321_vm2, %v8434_v13, 0.0  ;;  %v8439_v57 = vpop.eup %7480  ;;  %7496 = vpow2.f32 %v3512_v20  ;;  %v6737_v20 = vunpack.c.l.bf16 %v6739_v3 }
 0x30a   : > { %v3583_v58 = vsel %vm3321_vm2, %v8439_v57, 0.0  ;;  %v8443_v19 = vpop.eup %7482 }
 0x30b   : > { %v8445_v16 = vpop.eup %7484  ;;  %v3589_v5 = vsel %vm3321_vm2, %v8443_v19, 0.0 }
 0x30c   : > { %3572 = vadd.xlane.f32.xlu0 %v3571_v6  ;;  %v8449_v18 = vpop.eup %7486  ;;  %v3565_v24 = vsel %vm3321_vm2, %v8445_v16, 0.0 }
 0x30d   : > { %v3592_v26 = vsel %vm3321_vm2, %v8449_v18, 0.0 }
 0x30e   : > { %v8453_v37 = vpop.eup %7488 }
 0x30f   : > { %8847 = vst [vmem:[#allocation18_spill] sm:$0xff] %v8453_v37  ;;  %v8457_v9 = vpop.eup %7490  ;;  %v3595_v35 = vsel %vm3321_vm2, %v8453_v37, 0.0 }
 0x310   : > { %3578 = vadd.xlane.f32.xlu0 %v3577_v22  ;;  %v3598_v29 = vsel %vm3321_vm2, %v8457_v9, 0.0  ;;  %v6738_v22 = vunpack.c.h.bf16 %v6739_v3 }
 0x312   : > { %v8461_v60 = vpop.eup %7492 }
 0x313   : > { %8848 = vst [vmem:[#allocation19_spill] sm:$0xff] %v8461_v60  ;;  %v8465_v23 = vpop.eup %7494  ;;  %v3601_v14 = vsel %vm3321_vm2, %v8461_v60, 0.0 }
 0x314   : > { %3584 = vadd.xlane.f32.xlu0 %v3583_v58  ;;  %v3604_v6 = vsel %vm3321_vm2, %v8465_v23, 0.0  ;;  %v6734_v58 = vunpack.c.h.bf16 %v6732_v4 }
 0x316   : > { %v8469_v56 = vpop.eup %7496 }
 0x317   : > { %8849 = vst [vmem:[#allocation20_spill] sm:$0xff] %v8469_v56  ;;  %v3607_v25 = vsel %vm3321_vm2, %v8469_v56, 0.0 }
 0x318   : > { %3590 = vadd.xlane.f32.xlu0 %v3589_v5  ;;  %v6733_v5 = vunpack.c.l.bf16 %v6732_v4 }
 0x319   : > { %3566 = vadd.xlane.f32.xlu1 %v3565_v24 }
 0x31c   : > { %3593 = vadd.xlane.f32.xlu0 %v3592_v26 }
 0x31d   : > { %3596 = vadd.xlane.f32.xlu1 %v3595_v35 }
 0x320   : > { %3599 = vadd.xlane.f32.xlu0 %v3598_v29 }
 0x321   : > { %3602 = vadd.xlane.f32.xlu1 %v3601_v14 }
 0x324   : > { %3605 = vadd.xlane.f32.xlu0 %v3604_v6 }
 0x325   : > { %3608 = vadd.xlane.f32.xlu1 %v3607_v25 }
 0x336   : > { %6356 = vrot.lane.b32.xlu1 %v6737_v20, %s7629_s25 }
 0x33a   : > { %6358 = vrot.lane.b32.xlu0 %v6738_v22, %s7629_s25  ;;  %6354 = vrot.lane.b32.xlu1 %v6734_v58, %s7629_s25 }
 0x33e   : > { %6352 = vrot.lane.b32.xlu0 %v6733_v5, %s7629_s25 }
 0x341   : > { %v3516_v24 = vpop.xlane.xlu0 %3515 }
 0x342   : > { %7498 = vrcp.f32 %v3516_v24 }
 0x345   : > { %v3519_v26 = vpop.xlane.xlu1 %3518 }
 0x346   : > { %7500 = vrcp.f32 %v3519_v26 }
 0x349   : > { %v3522_v35 = vpop.xlane.xlu0 %3521 }
 0x34a   : > { %7502 = vrcp.f32 %v3522_v35 }
 0x34d   : > { %v3525_v29 = vpop.xlane.xlu1 %3524 }
 0x34e   : > { %7504 = vrcp.f32 %v3525_v29 }
 0x34f   : > { %v7499_v56 = vpop.eup %7498 }
 0x350   : > { %v3642_v35 = vmul.f32 %v7499_v56, %v8316_v27 }
 0x351   : > { %v3528_v14 = vpop.xlane.xlu0 %3527 }
 0x352   : > { %7506 = vrcp.f32 %v3528_v14 }
 0x353   : > { %v7501_v5 = vpop.eup %7500 }
 0x354   : > { %v3643_v29 = vmul.f32 %v7501_v5, %v8321_v63 }
 0x355   : > { %v3531_v6 = vpop.xlane.xlu1 %3530 }
 0x356   : > { %7508 = vrcp.f32 %v3531_v6 }
 0x357   : > { %v7503_v14 = vpop.eup %7502 }
 0x359   : > { %v3534_v25 = vpop.xlane.xlu0 %3533 }
 0x35a   : > { %7510 = vrcp.f32 %v3534_v25 }
 0x35b   : > { %v7505_v6 = vpop.eup %7504 }
 0x35c   : > { %v3645_v63 = vmul.f32 %v7505_v6, %v8331_v61 }
 0x35d   : > { %v3537_v3 = vpop.xlane.xlu1 %3536 }
 0x35e   : > { %7512 = vrcp.f32 %v3537_v3  ;;  %v8850_v3 = vmov 0.0  }
 0x35f   : > { %v7507_v27 = vpop.eup %7506 }
 0x361   : > { %v3540_v22 = vpop.xlane.xlu0 %3539 }
 0x362   : > { %7514 = vrcp.f32 %v3540_v22 }
 0x365   : > { %v3543_v20 = vpop.xlane.xlu1 %3542 }
 0x366   : > { %7516 = vrcp.f32 %v3543_v20 }
 0x369   : > { %v3546_v4 = vpop.xlane.xlu0 %3545 }
 0x36a   : > { %7518 = vrcp.f32 %v3546_v4 }
 0x36d   : > { %v3549_v58 = vpop.xlane.xlu1 %3548 }
 0x36e   : > { %7520 = vrcp.f32 %v3549_v58 }
 0x371   : > { %v3552_v60 = vpop.xlane.xlu0 %3551  ;;  %v8485_v37 = vpop.permute.xlu1 %693 }
 0x372   : > { %v731_v24 = vadd.f32 %v8121_v32, %v8485_v37  ;;  %v734_v26 = vadd.f32 %v8125_v11, %v8485_v37  ;;  %v739_v32 = vadd.f32 %v8115_v31, %v8485_v37  ;;  %v742_v11 = vadd.f32 %v8123_v21, %v8485_v37  ;;  %v7509_v21 = vpop.eup %7508 }
 0x373   : > { %v3644_v31 = vmul.f32 %v7503_v14, %v8326_v17  ;;  %v747_v22 = vadd.f32 %v8129_v40, %v8485_v37  ;;  %v750_v20 = vadd.f32 %v8133_v43, %v8485_v37  ;;  %7522 = vrcp.f32 %v3552_v60  ;;  %v7511_v17 = vpop.eup %7510 }
 0x374   : > { %7199 = vmatpush3.msra.mxu0 %v731_v24  ;;  %7204 = vmatpush3.msra.mxu1 %v734_v26  ;;  %v3646_v40 = vmul.f32 %v7507_v27, %v8336_v53  ;;  %v3647_v61 = vmul.f32 %v7509_v21, %v8341_v7  ;;  %v7513_v43 = vpop.eup %7512  ;;  %v755_v4 = vadd.f32 %v8127_v34, %v8485_v37 }
 0x375   : > { %v3555_v25 = vpop.xlane.xlu0 %3554  ;;  %7201 = vmatmul.mubr.msk.f32.vlgmr.msra.gmra.mxu0 %vm3321_vm2, %v3642_v35  ;;  %7206 = vmatmul.mubr.msk.f32.vlgmr.msra.gmra.mxu1 %vm3321_vm2, %v3643_v29  ;;  %v758_v58 = vadd.f32 %v8131_v42, %v8485_v37  ;;  %v7515_v53 = vpop.eup %7514  ;;  %v3648_v34 = vmul.f32 %v7511_v17, %v8346_v39  ;;  %v3649_v7 = vmul.f32 %v7513_v43, %v8351_v0  ;;  %v8852_v43 = vld [vmem:[#allocation6_spill] sm:$0xff] }
 0x376   : > { %7208 = vmatprep.subr.mxu0 %v8850_v3  ;;  %7213 = vmatprep.subr.mxu1 %v8850_v3  ;;  %7524 = vrcp.f32 %v3555_v25  ;;  %v7517_v42 = vpop.eup %7516  ;;  %v763_v24 = vadd.f32 %v8137_v45, %v8485_v37  ;;  %v766_v26 = vadd.f32 %v8141_v46, %v8485_v37  ;;  %v3650_v0 = vmul.f32 %v7515_v53, %v8356_v59  ;;  %v8853_v53 = vld [vmem:[#allocation11_spill] sm:$0xff] }
 0x377   : > { %7209 = vmatpush3.msra.mxu0 %v739_v32  ;;  %7214 = vmatpush3.msra.mxu1 %v742_v11  ;;  %v7519_v39 = vpop.eup %7518  ;;  %v3651_v45 = vmul.f32 %v7517_v42, %v8361_v10  ;;  %v771_v29 = vadd.f32 %v8135_v44, %v8485_v37  ;;  %v774_v14 = vadd.f32 %v8139_v36, %v8485_v37 }
 0x378   : > { %7210 = vmatprep.mubr.msk.f32.mxu0 %vm7628_vm1, %v8850_v3  ;;  %7215 = vmatprep.mubr.msk.f32.mxu1 %vm7628_vm1, %v8850_v3  ;;  %v3652_v10 = vmul.f32 %v7519_v39, %v8366_v55  ;;  %v779_v25 = vadd.f32 %v8145_v48, %v8485_v37  ;;  %v782_v32 = vadd.f32 %v8149_v51, %v8485_v37 }
 0x379   : > { %7218 = vmatprep.subr.mxu0 %v8850_v3  ;;  %7223 = vmatprep.subr.mxu1 %v8850_v3  ;;  %v3558_v56 = vpop.xlane.xlu0 %3557  ;;  %v787_v27 = vadd.f32 %v8143_v47, %v8485_v37  ;;  %v798_v21 = vadd.f32 %v8157_v54, %v8485_v37 }
 0x37a   : > { %7211 = vmatmul.mubr.msk.f32.vlgmr.msra.gmra.mxu0 %vm3321_vm2, %v3644_v31  ;;  %7216 = vmatmul.mubr.msk.f32.vlgmr.msra.gmra.mxu1 %vm3321_vm2, %v3645_v63  ;;  %7526 = vrcp.f32 %v3558_v56  ;;  %v790_v31 = vadd.f32 %v8147_v49, %v8485_v37  ;;  %v795_v63 = vadd.f32 %v8153_v52, %v8485_v37  ;;  %v803_v52 = vadd.f32 %v8151_v33, %v8485_v37 }
 0x37b   : > { %7219 = vmatpush3.msra.mxu0 %v747_v22  ;;  %7224 = vmatpush3.msra.mxu1 %v750_v20  ;;  %v7521_v35 = vpop.eup %7520  ;;  %v8851_v20 = vld [vmem:[#allocation7_spill] sm:$0xff] }
 0x37c   : > { %7220 = vmatprep.mubr.msk.f32.mxu0 %vm7628_vm1, %v8850_v3  ;;  %7225 = vmatprep.mubr.msk.f32.mxu1 %vm7628_vm1, %v8850_v3  ;;  %v3653_v44 = vmul.f32 %v7521_v35, %v8371_v62  ;;  %v811_v33 = vadd.f32 %v8851_v20, %v8485_v37  ;;  %v8855_v35 = vld [vmem:[#allocation5_spill] sm:$0xff] }
 0x37d   : > { %7228 = vmatprep.subr.mxu0 %v8850_v3  ;;  %7233 = vmatprep.subr.mxu1 %v8850_v3  ;;  %v3561_v60 = vpop.xlane.xlu0 %3560 }
 0x37e   : > { %7221 = vmatmul.mubr.msk.f32.vlgmr.msra.gmra.mxu0 %vm3321_vm2, %v3646_v40  ;;  %7226 = vmatmul.mubr.msk.f32.vlgmr.msra.gmra.mxu1 %vm3321_vm2, %v3647_v61  ;;  %7528 = vrcp.f32 %v3561_v60 }
 0x37f   : > { %7229 = vmatpush3.msra.mxu0 %v755_v4  ;;  %7234 = vmatpush3.msra.mxu1 %v758_v58 }
 0x380   : > { %7230 = vmatprep.mubr.msk.f32.mxu0 %vm7628_vm1, %v8850_v3  ;;  %7235 = vmatprep.mubr.msk.f32.mxu1 %vm7628_vm1, %v8850_v3  ;;  %v7523_v59 = vpop.eup %7522 }
 0x381   : > { %7238 = vmatprep.subr.mxu0 %v8850_v3  ;;  %7243 = vmatprep.subr.mxu1 %v8850_v3  ;;  %v3564_v5 = vpop.xlane.xlu0 %3563  ;;  %v3654_v62 = vmul.f32 %v7523_v59, %v8376_v2 }
 0x382   : > { %7231 = vmatmul.mubr.msk.f32.vlgmr.msra.gmra.mxu0 %vm3321_vm2, %v3648_v34  ;;  %7236 = vmatmul.mubr.msk.f32.vlgmr.msra.gmra.mxu1 %vm3321_vm2, %v3649_v7  ;;  %7530 = vrcp.f32 %v3564_v5 }
 0x383   : > { %7239 = vmatpush3.msra.mxu0 %v763_v24  ;;  %7244 = vmatpush3.msra.mxu1 %v766_v26  ;;  %v7525_v6 = vpop.eup %7524 }
 0x384   : > { %7240 = vmatprep.mubr.msk.f32.mxu0 %vm7628_vm1, %v8850_v3  ;;  %7245 = vmatprep.mubr.msk.f32.mxu1 %vm7628_vm1, %v8850_v3  ;;  %v3655_v48 = vmul.f32 %v7525_v6, %v8381_v15 }
 0x385   : > { %7248 = vmatprep.subr.mxu0 %v8850_v3  ;;  %7253 = vmatprep.subr.mxu1 %v8850_v3  ;;  %v3570_v46 = vpop.xlane.xlu0 %3569 }
 0x386   : > { %7241 = vmatmul.mubr.msk.f32.vlgmr.msra.gmra.mxu0 %vm3321_vm2, %v3650_v0  ;;  %7246 = vmatmul.mubr.msk.f32.vlgmr.msra.gmra.mxu1 %vm3321_vm2, %v3651_v45  ;;  %7532 = vrcp.f32 %v3570_v46  ;;  %v806_v46 = vadd.f32 %v8855_v35, %v8485_v37 }
 0x387   : > { %7249 = vmatpush3.msra.mxu0 %v771_v29  ;;  %7254 = vmatpush3.msra.mxu1 %v774_v14  ;;  %v7527_v55 = vpop.eup %7526 }
 0x388   : > { %7250 = vmatprep.mubr.msk.f32.mxu0 %vm7628_vm1, %v8850_v3  ;;  %7255 = vmatprep.mubr.msk.f32.mxu1 %vm7628_vm1, %v8850_v3  ;;  %v3656_v2 = vmul.f32 %v7527_v55, %v8386_v8 }
 0x389   : > { %7258 = vmatprep.subr.mxu0 %v8850_v3  ;;  %7263 = vmatprep.subr.mxu1 %v8850_v3  ;;  %v3576_v36 = vpop.xlane.xlu0 %3575 }
 0x38a   : > { %7251 = vmatmul.mubr.msk.f32.vlgmr.msra.gmra.mxu0 %vm3321_vm2, %v3652_v10  ;;  %7256 = vmatmul.mubr.msk.f32.vlgmr.msra.gmra.mxu1 %vm3321_vm2, %v3653_v44  ;;  %7534 = vrcp.f32 %v3576_v36  ;;  %v8856_v10 = vld [vmem:[#allocation15_spill] sm:$0xff]  ;;  %v8857_v36 = vld [vmem:[#allocation9_spill] sm:$0xff] }
 0x38b   : > { %7259 = vmatpush3.msra.mxu0 %v779_v25  ;;  %7264 = vmatpush3.msra.mxu1 %v782_v32  ;;  %v7529_v11 = vpop.eup %7528  ;;  %v814_v25 = vadd.f32 %v8857_v36, %v8485_v37 }
 0x38c   : > { %7260 = vmatprep.mubr.msk.f32.mxu0 %vm7628_vm1, %v8850_v3  ;;  %7265 = vmatprep.mubr.msk.f32.mxu1 %vm7628_vm1, %v8850_v3  ;;  %v3657_v47 = vmul.f32 %v7529_v11, %v8391_v28 }
 0x38d   : > { %7268 = vmatprep.subr.mxu0 %v8850_v3  ;;  %7273 = vmatprep.subr.mxu1 %v8850_v3  ;;  %v3582_v51 = vpop.xlane.xlu0 %3581 }
 0x38e   : > { %7261 = vmatmul.mubr.msk.f32.vlgmr.msra.gmra.mxu0 %vm3321_vm2, %v3654_v62  ;;  %7266 = vmatmul.mubr.msk.f32.vlgmr.msra.gmra.mxu1 %vm3321_vm2, %v3655_v48  ;;  %7536 = vrcp.f32 %v3582_v51  ;;  %v8859_v51 = vld [vmem:[#allocation8_spill] sm:$0xff] }
 0x38f   : > { %7269 = vmatpush3.msra.mxu0 %v787_v27  ;;  %7274 = vmatpush3.msra.mxu1 %v790_v31  ;;  %v7531_v15 = vpop.eup %7530 }
 0x390   : > { %7270 = vmatprep.mubr.msk.f32.mxu0 %vm7628_vm1, %v8850_v3  ;;  %7275 = vmatprep.mubr.msk.f32.mxu1 %vm7628_vm1, %v8850_v3  ;;  %v3658_v8 = vmul.f32 %v7531_v15, %v8401_v30 }
 0x391   : > { %7278 = vmatprep.subr.mxu0 %v8850_v3  ;;  %7283 = vmatprep.subr.mxu1 %v8850_v3  ;;  %v3588_v49 = vpop.xlane.xlu0 %3587 }
 0x392   : > { %7271 = vmatmul.mubr.msk.f32.vlgmr.msra.gmra.mxu0 %vm3321_vm2, %v3656_v2  ;;  %7276 = vmatmul.mubr.msk.f32.vlgmr.msra.gmra.mxu1 %vm3321_vm2, %v3657_v47  ;;  %7538 = vrcp.f32 %v3588_v49  ;;  %v8860_v47 = vld [vmem:[#allocation13_spill] sm:$0xff] }
 0x393   : > { %7279 = vmatpush3.msra.mxu0 %v795_v63  ;;  %7284 = vmatpush3.msra.mxu1 %v798_v21  ;;  %v7533_v28 = vpop.eup %7532  ;;  %v830_v15 = vadd.f32 %v8860_v47, %v8485_v37  ;;  %v8861_v63 = vld [vmem:[#allocation12_spill] sm:$0xff]  ;;  %v8862_v21 = vld [vmem:[#allocation18_spill] sm:$0xff] }
 0x394   : > { %7280 = vmatprep.mubr.msk.f32.mxu0 %vm7628_vm1, %v8850_v3  ;;  %7288 = vmatprep.subr.mxu0 %v8850_v3  ;;  %v3660_v54 = vmul.f32 %v7533_v28, %v8406_v38  ;;  %v819_v38 = vadd.f32 %v8852_v43, %v8485_v37 }
 0x395   : > { %v3573_v56 = vpop.xlane.xlu0 %3572  ;;  %7285 = vmatprep.mubr.msk.f32.mxu1 %vm7628_vm1, %v8850_v3  ;;  %7293 = vmatprep.subr.mxu1 %v8850_v3 }
 0x396   : > { %7281 = vmatmul.mubr.msk.f32.vlgmr.msra.gmra.mxu0 %vm3321_vm2, %v3658_v8 }
 0x397   : > { %7289 = vmatpush3.msra.mxu0 %v803_v52  ;;  %7290 = vmatprep.mubr.msk.f32.mxu0 %vm7628_vm1, %v8850_v3  ;;  %v7535_v30 = vpop.eup %7534 }
 0x398   : > { %7298 = vmatprep.subr.mxu0 %v8850_v3  ;;  %v3662_v17 = vmul.f32 %v7535_v30, %v8411_v41  ;;  %v827_v41 = vadd.f32 %v8853_v53, %v8485_v37 }
 0x399   : > { %v3579_v22 = vpop.xlane.xlu0 %3578 }
 0x39a   : > { %7291 = vmatmul.mubr.msk.f32.vlgmr.msra.gmra.mxu0 %vm3321_vm2, %v3660_v54 }
 0x39b   : > { %7299 = vmatpush3.msra.mxu0 %v811_v33  ;;  %7300 = vmatprep.mubr.msk.f32.mxu0 %vm7628_vm1, %v8850_v3  ;;  %v7537_v40 = vpop.eup %7536  ;;  %v8866_v33 = vld [vmem:[#allocation20_spill] sm:$0xff] }
 0x39c   : > { %7308 = vmatprep.subr.mxu0 %v8850_v3  ;;  %v3664_v60 = vmul.f32 %v7537_v40, %v8417_v1  ;;  %v8854_v1 = vld [vmem:[#allocation10_spill] sm:$0xff] }
 0x39d   : > { %v3585_v61 = vpop.xlane.xlu0 %3584  ;;  %v835_v5 = vadd.f32 %v8854_v1, %v8485_v37 }
 0x39e   : > { %7301 = vmatmul.mubr.msk.f32.vlgmr.msra.gmra.mxu0 %vm3321_vm2, %v3662_v17 }
 0x39f   : > { %7309 = vmatpush3.msra.mxu0 %v819_v38  ;;  %7310 = vmatprep.mubr.msk.f32.mxu0 %vm7628_vm1, %v8850_v3  ;;  %v7539_v4 = vpop.eup %7538 }
 0x3a0   : > { %7318 = vmatprep.subr.mxu0 %v8850_v3  ;;  %v3666_v7 = vmul.f32 %v7539_v4, %v8423_v50 }
 0x3a1   : > { %v3591_v58 = vpop.xlane.xlu0 %3590 }
 0x3a2   : > { %7311 = vmatmul.mubr.msk.f32.vlgmr.msra.gmra.mxu0 %vm3321_vm2, %v3664_v60  ;;  %v3567_v34 = vpop.xlane.xlu1 %3566 }
 0x3a3   : > { %7319 = vmatpush3.msra.mxu0 %v827_v41  ;;  %7540 = vrcp.f32 %v3567_v34  ;;  %7320 = vmatprep.mubr.msk.f32.mxu0 %vm7628_vm1, %v8850_v3 }
 0x3a4   : > { %7328 = vmatprep.subr.mxu0 %v8850_v3  ;;  %7542 = vrcp.f32 %v3573_v56  ;;  %v8863_v56 = vld [vmem:[#allocation17_spill] sm:$0xff] }
 0x3a5   : > { %v3594_v42 = vpop.xlane.xlu0 %3593  ;;  %v846_v52 = vadd.f32 %v8863_v56, %v8485_v37 }
 0x3a6   : > { %7544 = vrcp.f32 %v3594_v42  ;;  %7321 = vmatmul.mubr.msk.f32.vlgmr.msra.gmra.mxu0 %vm3321_vm2, %v3666_v7  ;;  %v3597_v50 = vpop.xlane.xlu1 %3596 }
 0x3a7   : > { %7329 = vmatpush3.msra.mxu0 %v835_v5  ;;  %7330 = vmatprep.mubr.msk.f32.mxu0 %vm7628_vm1, %v8850_v3  ;;  %7546 = vrcp.f32 %v3579_v22  ;;  %v8865_v22 = vld [vmem:[#allocation16_spill] sm:$0xff] }
 0x3a8   : > { %7338 = vmatprep.subr.mxu0 %v8850_v3  ;;  %v854_v20 = vadd.f32 %v8865_v22, %v8485_v37 }
 0x3a9   : > { %v3600_v24 = vpop.xlane.xlu0 %3599 }
 0x3aa   : > { %7548 = vrcp.f32 %v3600_v24  ;;  %v3603_v14 = vpop.xlane.xlu1 %3602 }
 0x3ab   : > { %7550 = vrcp.f32 %v3585_v61 }
 0x3ad   : > { %v3606_v26 = vpop.xlane.xlu0 %3605 }
 0x3ae   : > { %7552 = vrcp.f32 %v3606_v26  ;;  %v3609_v11 = vpop.xlane.xlu1 %3608 }
 0x3af   : > { %7554 = vrcp.f32 %v3591_v58 }
 0x3b0   : > { %v7541_v39 = vpop.eup %7540  ;;  %7556 = vrcp.f32 %v3597_v50 }
 0x3b1   : > { %v3659_v0 = vmul.f32 %v7541_v39, %v8445_v16  ;;  %v7543_v45 = vpop.eup %7542  ;;  %v843_v16 = vadd.f32 %v8856_v10, %v8485_v37  ;;  %7558 = vrcp.f32 %v3603_v14  ;;  %v6359_v40 = vpop.permute.xlu0 %6358 }
 0x3b2   : > { %v3661_v44 = vmul.f32 %v7543_v45, %v8428_v12  ;;  %v8858_v12 = vld [vmem:[#allocation14_spill] sm:$0xff]  ;;  %7560 = vrcp.f32 %v3609_v11  ;;  %v6357_v61 = vpop.permute.xlu1 %6356 }
 0x3b3   : > { %v7545_v29 = vpop.eup %7544  ;;  %7286 = vmatmul.mubr.msk.f32.vlgmr.msra.gmra.mxu1 %vm3321_vm2, %v3659_v0  ;;  %v851_v55 = vadd.f32 %v8858_v12, %v8485_v37 }
 0x3b4   : > { %7294 = vmatpush3.msra.mxu1 %v806_v46  ;;  %7295 = vmatprep.mubr.msk.f32.mxu1 %vm7628_vm1, %v8850_v3  ;;  %v3668_v59 = vmul.f32 %v7545_v29, %v8449_v18  ;;  %v7547_v6 = vpop.eup %7546 }
 0x3b5   : > { %7303 = vmatprep.subr.mxu1 %v8850_v3  ;;  %v3663_v62 = vmul.f32 %v7547_v6, %v8434_v13  ;;  %v6353_v38 = vpop.permute.xlu0 %6352 }
 0x3b6   : > { %7331 = vmatmul.mubr.msk.f32.vlgmr.msra.gmra.mxu0 %vm3321_vm2, %v3668_v59  ;;  %v6355_v43 = vpop.permute.xlu1 %6354 }
 0x3b7   : > { %v7549_v32 = vpop.eup %7548  ;;  %7339 = vmatpush3.msra.mxu0 %v843_v16  ;;  %7296 = vmatmul.mubr.msk.f32.vlgmr.msra.gmra.mxu1 %vm3321_vm2, %v3661_v44 }
 0x3b8   : > { %7304 = vmatpush3.msra.mxu1 %v814_v25  ;;  %7340 = vmatprep.mubr.msk.f32.mxu0 %vm7628_vm1, %v8850_v3  ;;  %v3670_v18 = vmul.f32 %v7549_v32, %v8457_v9  ;;  %v7551_v48 = vpop.eup %7550  ;;  %v822_v9 = vadd.f32 %v8859_v51, %v8485_v37 }
 0x3b9   : > { %7348 = vmatprep.subr.mxu0 %v8850_v3  ;;  %7305 = vmatprep.mubr.msk.f32.mxu1 %vm7628_vm1, %v8850_v3  ;;  %v3665_v13 = vmul.f32 %v7551_v48, %v8439_v57  ;;  %v838_v57 = vadd.f32 %v8861_v63, %v8485_v37  ;;  %v6722_v37 = vld [vmem:[%s8825_s2] ss:$0 sm:$0xff] }
 0x3ba   : > { %7313 = vmatprep.subr.mxu1 %v8850_v3  ;;  %7341 = vmatmul.mubr.msk.f32.vlgmr.msra.gmra.mxu0 %vm3321_vm2, %v3670_v18 }
 0x3bb   : > { %v7553_v27 = vpop.eup %7552  ;;  %7349 = vmatpush3.msra.mxu0 %v851_v55  ;;  %7306 = vmatmul.mubr.msk.f32.vlgmr.msra.gmra.mxu1 %vm3321_vm2, %v3663_v62 }
 0x3bc   : > { %7314 = vmatpush3.msra.mxu1 %v822_v9  ;;  %7350 = vmatprep.mubr.msk.f32.mxu0 %vm7628_vm1, %v8850_v3  ;;  %v3672_v31 = vmul.f32 %v7553_v27, %v8465_v23  ;;  %v7555_v2 = vpop.eup %7554 }
 0x3bd   : > { %7315 = vmatprep.mubr.msk.f32.mxu1 %vm7628_vm1, %v8850_v3  ;;  %7323 = vmatprep.subr.mxu1 %v8850_v3  ;;  %v3667_v23 = vmul.f32 %v7555_v2, %v8443_v19  ;;  %v7557_v49 = vpop.eup %7556  ;;  %v8864_v19 = vld [vmem:[#allocation19_spill] sm:$0xff] }
 0x3be   : > { %7351 = vmatmul.mubr.msk.f32.vlgmr.msra.gmra.mxu0 %vm3321_vm2, %v3672_v31  ;;  %v3669_v8 = vmul.f32 %v7557_v49, %v8862_v21  ;;  %v7559_v28 = vpop.eup %7558  ;;  %7358 = vmatprep.subr.mxu0 %v6359_v40 }
 0x3bf   : > { %7316 = vmatmul.mubr.msk.f32.vlgmr.msra.gmra.mxu1 %vm3321_vm2, %v3665_v13  ;;  %v3671_v54 = vmul.f32 %v7559_v28, %v8864_v19  ;;  %v7561_v30 = vpop.eup %7560  ;;  %7359 = vmatpush3.msra.mxu0 %v6359_v40 }
 0x3c0   : > { %7324 = vmatpush3.msra.mxu1 %v830_v15  ;;  %7325 = vmatprep.mubr.msk.f32.mxu1 %vm7628_vm1, %v8850_v3  ;;  %v3673_v17 = vmul.f32 %v7561_v30, %v8866_v33 }
 0x3c1   : > { %7333 = vmatprep.subr.mxu1 %v8850_v3  ;;  %7360 = vmatprep.subr.mxu0 %v6357_v61 }
 0x3c2   : > { %7361 = vmatpush3.msra.mxu0 %v6357_v61  ;;  %6364 = vrot.lane.b32.xlu1 %v6722_v37, %s7629_s25 }
 0x3c3   : > { %7326 = vmatmul.mubr.msk.f32.vlgmr.msra.gmra.mxu1 %vm3321_vm2, %v3667_v23  ;;  %7362 = vmatprep.subr.mxu0 %v6355_v43 }
 0x3c4   : > { %7334 = vmatpush3.msra.mxu1 %v838_v57  ;;  %7335 = vmatprep.mubr.msk.f32.mxu1 %vm7628_vm1, %v8850_v3 }
 0x3c5   : > { %7343 = vmatprep.subr.mxu1 %v8850_v3  ;;  %7363 = vmatpush3.msra.mxu0 %v6355_v43 }
 0x3c6   : > { %7364 = vmatprep.subr.mxu0 %v6353_v38 }
 0x3c7   : > { %7336 = vmatmul.mubr.msk.f32.vlgmr.msra.gmra.mxu1 %vm3321_vm2, %v3669_v8  ;;  %7365 = vmatpush3.msra.mxu0 %v6353_v38 }
 0x3c8   : > { %7344 = vmatpush3.msra.mxu1 %v846_v52  ;;  %7345 = vmatprep.mubr.msk.f32.mxu1 %vm7628_vm1, %v8850_v3 }
 0x3c9   : > { %7353 = vmatprep.subr.mxu1 %v8850_v3 }
 0x3cb   : > { %7346 = vmatmul.mubr.msk.f32.vlgmr.msra.gmra.mxu1 %vm3321_vm2, %v3671_v54 }
 0x3cc   : > { %7354 = vmatpush3.msra.mxu1 %v854_v20  ;;  %7355 = vmatprep.mubr.msk.f32.mxu1 %vm7628_vm1, %v8850_v3 }
 0x3cf   : > { %7356 = vmatmul.mubr.msk.f32.vlgmr.msra.gmra.mxu1 %vm3321_vm2, %v3673_v17 }
 0x435   : > { %v3743_v3 = vpop.f32.mrf.mxu0  ;;  %v3816_v60 = vpop.f32.mrf.mxu1 }
 0x436   : > { %v6010_v4 = vsel %vm307_vm0, %v3743_v3, 0.0  ;;  %v6017_v58 = vsel %vm307_vm0, %v3816_v60, 0.0 }
 0x437   : > { %v6011_v53 = vrot.slane %v6010_v4, 4  ;;  %v6018_v41 = vrot.slane %v6017_v58, 4  ;;  %v7202_v34 = vpop.f32.mrf.mxu0  ;;  %v7207_v7 = vpop.f32.mrf.mxu1 }
 0x439   : > { %v6012_v42 = vadd.f32 %v6011_v53, %v6010_v4  ;;  %v6019_v1 = vadd.f32 %v6018_v41, %v6017_v58 }
 0x43a   : > { %v3889_v5 = vpop.f32.mrf.mxu0  ;;  %v3962_v24 = vpop.f32.mrf.mxu1 }
 0x43b   : > { %v6013_v26 = vrot.slane %v6012_v42, 2  ;;  %v6020_v50 = vrot.slane %v6019_v1, 2  ;;  %v6024_v39 = vsel %vm307_vm0, %v3889_v5, 0.0  ;;  %v6031_v0 = vsel %vm307_vm0, %v3962_v24, 0.0 }
 0x43c   : > { %v6025_v45 = vrot.slane %v6024_v39, 4  ;;  %v6032_v35 = vrot.slane %v6031_v0, 4  ;;  %v7212_v46 = vpop.f32.mrf.mxu0  ;;  %v7217_v29 = vpop.f32.mrf.mxu1 }
 0x43d   : > { %v6014_v14 = vadd.f32 %v6013_v26, %v6012_v42  ;;  %v6021_v59 = vadd.f32 %v6020_v50, %v6019_v1 }
 0x43e   : > { %v6026_v10 = vadd.f32 %v6025_v45, %v6024_v39  ;;  %v6033_v16 = vadd.f32 %v6032_v35, %v6031_v0  ;;  %v4035_v44 = vpop.f32.mrf.mxu0  ;;  %v4108_v6 = vpop.f32.mrf.mxu1 }
 0x43f   : > { %v6015_v36 = vrot.slane %v6014_v14, 1  ;;  %v6022_v25 = vrot.slane %v6021_v59, 1  ;;  %v6038_v32 = vsel %vm307_vm0, %v4035_v44, 0.0  ;;  %v6045_v18 = vsel %vm307_vm0, %v4108_v6, 0.0 }
 0x440   : > { %v6027_v12 = vrot.slane %v6026_v10, 2  ;;  %v6034_v55 = vrot.slane %v6033_v16, 2  ;;  %v6039_v62 = vrot.slane %v6038_v32, 4  ;;  %v6046_v48 = vrot.slane %v6045_v18, 4  ;;  %v7222_v11 = vpop.f32.mrf.mxu0  ;;  %v7227_v51 = vpop.f32.mrf.mxu1 }
 0x441   : > { %v6016_v9 = vadd.f32 %v6015_v36, %v6014_v14  ;;  %v6023_v27 = vadd.f32 %v6022_v25, %v6021_v59 }
 0x442   : > { %v6028_v31 = vadd.f32 %v6027_v12, %v6026_v10  ;;  %v6035_v13 = vadd.f32 %v6034_v55, %v6033_v16  ;;  %v6040_v2 = vadd.f32 %v6039_v62, %v6038_v32  ;;  %v6047_v47 = vadd.f32 %v6046_v48, %v6045_v18  ;;  %v4181_v15 = vpop.f32.mrf.mxu0  ;;  %v4254_v23 = vpop.f32.mrf.mxu1 }
 0x443   : > { %v6052_v49 = vsel %vm307_vm0, %v4181_v15, 0.0  ;;  %v6059_v63 = vsel %vm307_vm0, %v4254_v23, 0.0  ;;  %v6235_v19 = vmul.f32 0.125, %v6016_v9  ;;  %v6236_v54 = vmul.f32 0.125, %v6023_v27 }
 0x444   : > { %v6029_v57 = vrot.slane %v6028_v31, 1  ;;  %v6036_v21 = vrot.slane %v6035_v13, 1  ;;  %v6041_v8 = vrot.slane %v6040_v2, 2  ;;  %v6048_v28 = vrot.slane %v6047_v47, 2  ;;  %v7232_v56 = vpop.f32.mrf.mxu0  ;;  %v7237_v52 = vpop.f32.mrf.mxu1 }
 0x445   : > { %v6053_v30 = vrot.slane %v6052_v49, 4  ;;  %v6060_v22 = vrot.slane %v6059_v63, 4  ;;  %v6314_v24 = vsel %vm6313_vm3, %v6236_v54, %v6235_v19 }
 0x446   : > { %v6030_v20 = vadd.f32 %v6029_v57, %v6028_v31  ;;  %v6037_v33 = vadd.f32 %v6036_v21, %v6035_v13  ;;  %v6042_v17 = vadd.f32 %v6041_v8, %v6040_v2  ;;  %v6049_v40 = vadd.f32 %v6048_v28, %v6047_v47  ;;  %v4327_v61 = vpop.f32.mrf.mxu0  ;;  %v4400_v43 = vpop.f32.mrf.mxu1 }
 0x447   : > { %v6054_v38 = vadd.f32 %v6053_v30, %v6052_v49  ;;  %v6061_v37 = vadd.f32 %v6060_v22, %v6059_v63  ;;  %v6066_v3 = vsel %vm307_vm0, %v4327_v61, 0.0  ;;  %v6073_v60 = vsel %vm307_vm0, %v4400_v43, 0.0 }
 0x448   : > { %v6237_v4 = vmul.f32 0.125, %v6030_v20  ;;  %v6043_v58 = vrot.slane %v6042_v17, 1  ;;  %v6050_v53 = vrot.slane %v6049_v40, 1  ;;  %v7242_v41 = vpop.f32.mrf.mxu0  ;;  %v7247_v34 = vpop.f32.mrf.mxu1  ;;  %v6067_v1 = vrot.slane %v6066_v3, 4 }
 0x449   : > { %v6055_v7 = vrot.slane %v6054_v38, 2  ;;  %v6062_v42 = vrot.slane %v6061_v37, 2  ;;  %v6074_v5 = vrot.slane %v6073_v60, 4  ;;  %v6238_v26 = vmul.f32 0.125, %v6037_v33 }
 0x44a   : > { %v6044_v50 = vadd.f32 %v6043_v58, %v6042_v17  ;;  %v6051_v39 = vadd.f32 %v6050_v53, %v6049_v40  ;;  %v4473_v0 = vpop.f32.mrf.mxu0  ;;  %v4546_v45 = vpop.f32.mrf.mxu1  ;;  %v6316_v35 = vsel %vm6315_vm4, %v6237_v4, %v6314_v24  ;;  %v6068_v14 = vadd.f32 %v6067_v1, %v6066_v3 }
 0x44b   : > { %v6056_v46 = vadd.f32 %v6055_v7, %v6054_v38  ;;  %v6063_v29 = vadd.f32 %v6062_v42, %v6061_v37  ;;  %v6075_v10 = vadd.f32 %v6074_v5, %v6073_v60  ;;  %v6080_v16 = vsel %vm307_vm0, %v4473_v0, 0.0 }
 0x44c   : > { %v6239_v59 = vmul.f32 0.125, %v6044_v50  ;;  %v7252_v44 = vpop.f32.mrf.mxu0  ;;  %v7257_v6 = vpop.f32.mrf.mxu1  ;;  %v6069_v32 = vrot.slane %v6068_v14, 2  ;;  %v6081_v18 = vrot.slane %v6080_v16, 4  ;;  %v6318_v12 = vsel %vm6317_vm5, %v6238_v26, %v6316_v35 }
 0x44d   : > { %v6057_v36 = vrot.slane %v6056_v46, 1  ;;  %v6064_v25 = vrot.slane %v6063_v29, 1  ;;  %v6240_v55 = vmul.f32 0.125, %v6051_v39  ;;  %v6076_v62 = vrot.slane %v6075_v10, 2 }
 0x44e   : > { %v6087_v48 = vsel %vm307_vm0, %v4546_v45, 0.0  ;;  %v4619_v11 = vpop.f32.mrf.mxu0  ;;  %v4692_v51 = vpop.f32.mrf.mxu1  ;;  %v6070_v27 = vadd.f32 %v6069_v32, %v6068_v14  ;;  %v6082_v31 = vadd.f32 %v6081_v18, %v6080_v16  ;;  %v6320_v13 = vsel %vm6319_vm6, %v6239_v59, %v6318_v12 }
 0x44f   : > { %v6058_v9 = vadd.f32 %v6057_v36, %v6056_v46  ;;  %v6077_v2 = vadd.f32 %v6076_v62, %v6075_v10  ;;  %v6088_v47 = vrot.slane %v6087_v48, 4  ;;  %v6094_v15 = vsel %vm307_vm0, %v4619_v11, 0.0 }
 0x450   : > { %v6101_v23 = vsel %vm307_vm0, %v4692_v51, 0.0  ;;  %v7262_v49 = vpop.f32.mrf.mxu0  ;;  %v7267_v63 = vpop.f32.mrf.mxu1  ;;  %v6065_v21 = vadd.f32 %v6064_v25, %v6063_v29  ;;  %v6071_v8 = vrot.slane %v6070_v27, 1  ;;  %v6083_v28 = vrot.slane %v6082_v31, 2 }
 0x451   : > { %v6241_v57 = vmul.f32 0.125, %v6058_v9  ;;  %v6078_v56 = vrot.slane %v6077_v2, 1  ;;  %v6089_v52 = vadd.f32 %v6088_v47, %v6087_v48  ;;  %v6095_v19 = vrot.slane %v6094_v15, 4 }
 0x452   : > { %v6102_v54 = vrot.slane %v6101_v23, 4  ;;  %v4765_v30 = vpop.f32.mrf.mxu0  ;;  %v4838_v22 = vpop.f32.mrf.mxu1  ;;  %v6072_v20 = vadd.f32 %v6071_v8, %v6070_v27  ;;  %v6084_v33 = vadd.f32 %v6083_v28, %v6082_v31  ;;  %v6242_v4 = vmul.f32 0.125, %v6065_v21 }
 0x453   : > { %v6108_v17 = vsel %vm307_vm0, %v4765_v30, 0.0  ;;  %v6115_v40 = vsel %vm307_vm0, %v4838_v22, 0.0  ;;  %v6079_v61 = vadd.f32 %v6078_v56, %v6077_v2  ;;  %v6090_v43 = vrot.slane %v6089_v52, 2 }
 0x454   : > { %v6096_v38 = vadd.f32 %v6095_v19, %v6094_v15  ;;  %v6103_v37 = vadd.f32 %v6102_v54, %v6101_v23  ;;  %v7272_v3 = vpop.f32.mrf.mxu0  ;;  %v7277_v60 = vpop.f32.mrf.mxu1  ;;  %v6085_v58 = vrot.slane %v6084_v33, 1  ;;  %v6109_v53 = vrot.slane %v6108_v17, 4 }
 0x455   : > { %v6116_v41 = vrot.slane %v6115_v40, 4  ;;  %v6243_v34 = vmul.f32 0.125, %v6072_v20  ;;  %v6091_v7 = vadd.f32 %v6090_v43, %v6089_v52  ;;  %v6244_v24 = vmul.f32 0.125, %v6079_v61 }
 0x456   : > { %v6097_v42 = vrot.slane %v6096_v38, 2  ;;  %v6104_v1 = vrot.slane %v6103_v37, 2  ;;  %v4911_v5 = vpop.f32.mrf.mxu0  ;;  %v6086_v26 = vadd.f32 %v6085_v58, %v6084_v33  ;;  %v6110_v50 = vadd.f32 %v6109_v53, %v6108_v17 }
 0x457   : > { %v6117_v39 = vadd.f32 %v6116_v41, %v6115_v40  ;;  %v6092_v0 = vrot.slane %v6091_v7, 1  ;;  %v6322_v46 = vsel %vm6321_vm7, %v6240_v55, %v6320_v13  ;;  %v6327_v18 = vsel %vm6313_vm3, %v6244_v24, %v6243_v34 }
 0x458   : > { %v6098_v45 = vadd.f32 %v6097_v42, %v6096_v38  ;;  %v6105_v35 = vadd.f32 %v6104_v1, %v6103_v37  ;;  %v7282_v29 = vpop.f32.mrf.mxu0  ;;  %v6245_v14 = vmul.f32 0.125, %v6086_v26  ;;  %v6111_v59 = vrot.slane %v6110_v50, 2 }
 0x459   : > { %v6118_v10 = vrot.slane %v6117_v39, 2  ;;  %v6324_v16 = vsel %vm6323_vm8, %v6241_v57, %v6322_v46  ;;  %v6093_v44 = vadd.f32 %v6092_v0, %v6091_v7  ;;  %v6122_v52 = vsel %vm307_vm0, %v4911_v5, 0.0 }
 0x45a   : > { %v6099_v6 = vrot.slane %v6098_v45, 1  ;;  %v6106_v36 = vrot.slane %v6105_v35, 1  ;;  %v6326_v25 = vsel %vm6325_vm9, %v6242_v4, %v6324_v16  ;;  %v5057_v32 = vpop.f32.mrf.mxu0  ;;  %v6112_v12 = vadd.f32 %v6111_v59, %v6110_v50 }
 0x45b   : > { %v6119_v62 = vadd.f32 %v6118_v10, %v6117_v39  ;;  %7366 = vmatprep.mubr.msk.f32.mxu0 %vm307_vm0, %v6326_v25  ;;  %v6328_v55 = vsel %vm6315_vm4, %v6245_v14, %v6327_v18  ;;  %v6246_v48 = vmul.f32 0.125, %v6093_v44  ;;  %v6123_v22 = vrot.slane %v6122_v52, 4 }
 0x45c   : > { %v6100_v11 = vadd.f32 %v6099_v6, %v6098_v45  ;;  %v6107_v51 = vadd.f32 %v6106_v36, %v6105_v35  ;;  %v7292_v9 = vpop.f32.mrf.mxu0  ;;  %v6113_v27 = vrot.slane %v6112_v12, 1  ;;  %v6136_v33 = vsel %vm307_vm0, %v5057_v32, 0.0 }
 0x45d   : > { %v6120_v31 = vrot.slane %v6119_v62, 1  ;;  %v6329_v15 = vsel %vm6317_vm5, %v6246_v48, %v6328_v55  ;;  %v6124_v61 = vadd.f32 %v6123_v22, %v6122_v52  ;;  %v6137_v43 = vrot.slane %v6136_v33, 4 }
 0x45e   : > { %v6247_v13 = vmul.f32 0.125, %v6100_v11  ;;  %v6248_v2 = vmul.f32 0.125, %v6107_v51  ;;  %v5203_v47 = vpop.f32.mrf.mxu0  ;;  %v6114_v23 = vadd.f32 %v6113_v27, %v6112_v12 }
 0x45f   : > { %v6121_v49 = vadd.f32 %v6120_v31, %v6119_v62  ;;  %v6150_v40 = vsel %vm307_vm0, %v5203_v47, 0.0  ;;  %v6125_v37 = vrot.slane %v6124_v61, 2  ;;  %v6138_v3 = vadd.f32 %v6137_v43, %v6136_v33 }
 0x460   : > { %v6330_v63 = vsel %vm6319_vm6, %v6247_v13, %v6329_v15  ;;  %v7302_v57 = vpop.f32.mrf.mxu0  ;;  %v6249_v21 = vmul.f32 0.125, %v6114_v23  ;;  %v6151_v38 = vrot.slane %v6150_v40, 4 }
 0x461   : > { %v6250_v8 = vmul.f32 0.125, %v6121_v49  ;;  %v6331_v56 = vsel %vm6321_vm7, %v6248_v2, %v6330_v63  ;;  %v6126_v58 = vadd.f32 %v6125_v37, %v6124_v61  ;;  %v6139_v41 = vrot.slane %v6138_v3, 2 }
 0x462   : > { %v5349_v28 = vpop.f32.mrf.mxu0  ;;  %v6332_v19 = vsel %vm6323_vm8, %v6249_v21, %v6331_v56  ;;  %v6152_v4 = vadd.f32 %v6151_v38, %v6150_v40 }
 0x463   : > { %v6333_v30 = vsel %vm6325_vm9, %v6250_v8, %v6332_v19  ;;  %v6164_v60 = vsel %vm307_vm0, %v5349_v28, 0.0  ;;  %v6127_v24 = vrot.slane %v6126_v58, 1  ;;  %v6140_v39 = vadd.f32 %v6139_v41, %v6138_v3 }
 0x464   : > { %v7312_v54 = vpop.f32.mrf.mxu0  ;;  %7367 = vmatmul.mubr.msk.f32.vlgmr.msra.gmra.mxu0 %vm307_vm0, %v6333_v30  ;;  %v6165_v53 = vrot.slane %v6164_v60, 4  ;;  %v6153_v7 = vrot.slane %v6152_v4, 2 }
 0x465   : > { %v6128_v6 = vadd.f32 %v6127_v24, %v6126_v58  ;;  %v6141_v12 = vrot.slane %v6140_v39, 1 }
 0x466   : > { %v5495_v20 = vpop.f32.mrf.mxu0  ;;  %v6166_v26 = vadd.f32 %v6165_v53, %v6164_v60  ;;  %v6154_v29 = vadd.f32 %v6153_v7, %v6152_v4 }
 0x467   : > { %v6178_v0 = vsel %vm307_vm0, %v5495_v20, 0.0  ;;  %v6251_v15 = vmul.f32 0.125, %v6128_v6  ;;  %v6142_v21 = vadd.f32 %v6141_v12, %v6140_v39 }
 0x468   : > { %v7322_v17 = vpop.f32.mrf.mxu0  ;;  %v6167_v36 = vrot.slane %v6166_v26, 2  ;;  %v6179_v25 = vrot.slane %v6178_v0, 4  ;;  %v6155_v11 = vrot.slane %v6154_v29, 1 }
 0x46a   : > { %v6168_v23 = vadd.f32 %v6167_v36, %v6166_v26  ;;  %v6180_v49 = vadd.f32 %v6179_v25, %v6178_v0  ;;  %v6156_v19 = vadd.f32 %v6155_v11, %v6154_v29 }
 0x46c   : > { %v6169_v38 = vrot.slane %v6168_v23, 1  ;;  %v6181_v37 = vrot.slane %v6180_v49, 2  ;;  %v6255_v7 = vmul.f32 0.125, %v6156_v19 }
 0x46e   : > { %v6170_v0 = vadd.f32 %v6169_v38, %v6168_v23 }
 0x473   : > { %v4984_v34 = vpop.f32.mrf.mxu1 }
 0x474   : > { %v6129_v42 = vsel %vm307_vm0, %v4984_v34, 0.0  ;;  %v6253_v34 = vmul.f32 0.125, %v6142_v21 }
 0x475   : > { %v6130_v1 = vrot.slane %v6129_v42, 4  ;;  %v7287_v5 = vpop.f32.mrf.mxu1 }
 0x476   : > { %v5641_v50 = vpop.f32.mrf.mxu0 }
 0x477   : > { %v6131_v45 = vadd.f32 %v6130_v1, %v6129_v42  ;;  %v6192_v35 = vsel %vm307_vm0, %v5641_v50, 0.0  ;;  %v5130_v46 = vpop.f32.mrf.mxu1 }
 0x478   : > { %v6143_v14 = vsel %vm307_vm0, %v5130_v46, 0.0  ;;  %v7332_v59 = vpop.f32.mrf.mxu0  ;;  %v6193_v32 = vrot.slane %v6192_v35, 4 }
 0x479   : > { %v6132_v10 = vrot.slane %v6131_v45, 2  ;;  %v6144_v16 = vrot.slane %v6143_v14, 4  ;;  %v7297_v44 = vpop.f32.mrf.mxu1 }
 0x47a   : > { %v5787_v18 = vpop.f32.mrf.mxu0  ;;  %v6194_v63 = vadd.f32 %v6193_v32, %v6192_v35 }
 0x47b   : > { %v6133_v62 = vadd.f32 %v6132_v10, %v6131_v45  ;;  %v6145_v55 = vadd.f32 %v6144_v16, %v6143_v14  ;;  %v5276_v48 = vpop.f32.mrf.mxu1  ;;  %v6206_v13 = vsel %vm307_vm0, %v5787_v18, 0.0  ;;  %v6182_v45 = vadd.f32 %v6181_v37, %v6180_v49 }
 0x47c   : > { %v6157_v51 = vsel %vm307_vm0, %v5276_v48, 0.0  ;;  %v7342_v9 = vpop.f32.mrf.mxu0  ;;  %v6207_v54 = vrot.slane %v6206_v13, 4  ;;  %v6195_v3 = vrot.slane %v6194_v63, 2 }
 0x47d   : > { %v6134_v27 = vrot.slane %v6133_v62, 1  ;;  %v6146_v31 = vrot.slane %v6145_v55, 2  ;;  %v6158_v2 = vrot.slane %v6157_v51, 4  ;;  %v7307_v47 = vpop.f32.mrf.mxu1  ;;  %v6183_v48 = vrot.slane %v6182_v45, 1 }
 0x47e   : > { %v5933_v57 = vpop.f32.mrf.mxu0  ;;  %v6208_v42 = vadd.f32 %v6207_v54, %v6206_v13  ;;  %v6196_v29 = vadd.f32 %v6195_v3, %v6194_v63 }
 0x47f   : > { %v6135_v8 = vadd.f32 %v6134_v27, %v6133_v62  ;;  %v6147_v28 = vadd.f32 %v6146_v31, %v6145_v55  ;;  %v6159_v56 = vadd.f32 %v6158_v2, %v6157_v51  ;;  %v5422_v52 = vpop.f32.mrf.mxu1  ;;  %v6220_v30 = vsel %vm307_vm0, %v5933_v57, 0.0 }
 0x480   : > { %v6171_v22 = vsel %vm307_vm0, %v5422_v52, 0.0  ;;  %v7352_v20 = vpop.f32.mrf.mxu0  ;;  %v6221_v1 = vrot.slane %v6220_v30, 4  ;;  %v6209_v44 = vrot.slane %v6208_v42, 2  ;;  %v6257_v55 = vmul.f32 0.125, %v6170_v0 }
 0x481   : > { %v6252_v33 = vmul.f32 0.125, %v6135_v8  ;;  %v6148_v17 = vrot.slane %v6147_v28, 1  ;;  %v6160_v40 = vrot.slane %v6159_v56, 2  ;;  %v6172_v61 = vrot.slane %v6171_v22, 4  ;;  %v7317_v43 = vpop.f32.mrf.mxu1 }
 0x482   : > { %v6222_v6 = vadd.f32 %v6221_v1, %v6220_v30  ;;  %v6197_v9 = vrot.slane %v6196_v29, 1  ;;  %v6210_v47 = vadd.f32 %v6209_v44, %v6208_v42 }
 0x483   : > { %v6334_v60 = vsel %vm6313_vm3, %v6252_v33, %v6251_v15  ;;  %v6149_v4 = vadd.f32 %v6148_v17, %v6147_v28  ;;  %v6161_v58 = vadd.f32 %v6160_v40, %v6159_v56  ;;  %v6173_v53 = vadd.f32 %v6172_v61, %v6171_v22  ;;  %v5568_v41 = vpop.f32.mrf.mxu1 }
 0x484   : > { %v6185_v50 = vsel %vm307_vm0, %v5568_v41, 0.0  ;;  %v6335_v35 = vsel %vm6315_vm4, %v6253_v34, %v6334_v60  ;;  %v6223_v15 = vrot.slane %v6222_v6, 2  ;;  %v6184_v28 = vadd.f32 %v6183_v48, %v6182_v45 }
 0x485   : > { %v6254_v5 = vmul.f32 0.125, %v6149_v4  ;;  %v6162_v24 = vrot.slane %v6161_v58, 1  ;;  %v6174_v26 = vrot.slane %v6173_v53, 2  ;;  %v7327_v39 = vpop.f32.mrf.mxu1  ;;  %v6186_v46 = vrot.slane %v6185_v50, 4 }
 0x486   : > { %v6198_v19 = vadd.f32 %v6197_v9, %v6196_v29  ;;  %v6211_v33 = vrot.slane %v6210_v47, 1  ;;  %v6224_v17 = vadd.f32 %v6223_v15, %v6222_v6  ;;  %v6259_v60 = vmul.f32 0.125, %v6184_v28 }
 0x487   : > { %v6336_v14 = vsel %vm6317_vm5, %v6254_v5, %v6335_v35  ;;  %v6163_v59 = vadd.f32 %v6162_v24, %v6161_v58  ;;  %v6175_v10 = vadd.f32 %v6174_v26, %v6173_v53  ;;  %v5714_v16 = vpop.f32.mrf.mxu1  ;;  %v6187_v36 = vadd.f32 %v6186_v46, %v6185_v50 }
 0x488   : > { %v6199_v25 = vsel %vm307_vm0, %v5714_v16, 0.0  ;;  %v6337_v51 = vsel %vm6319_vm6, %v6255_v7, %v6336_v14  ;;  %v6261_v34 = vmul.f32 0.125, %v6198_v19  ;;  %v6212_v7 = vadd.f32 %v6211_v33, %v6210_v47 }
 0x489   : > { %v6256_v32 = vmul.f32 0.125, %v6163_v59  ;;  %v6176_v18 = vrot.slane %v6175_v10, 1  ;;  %v6200_v12 = vrot.slane %v6199_v25, 4  ;;  %v7337_v62 = vpop.f32.mrf.mxu1  ;;  %v6188_v11 = vrot.slane %v6187_v36, 2 }
 0x48a   : > { %v6225_v42 = vrot.slane %v6224_v17, 1  ;;  %v6263_v35 = vmul.f32 0.125, %v6212_v7 }
 0x48b   : > { %v6177_v27 = vadd.f32 %v6176_v18, %v6175_v10  ;;  %v6201_v31 = vadd.f32 %v6200_v12, %v6199_v25  ;;  %v5860_v13 = vpop.f32.mrf.mxu1  ;;  %v6338_v2 = vsel %vm6321_vm7, %v6256_v32, %v6337_v51  ;;  %v6189_v23 = vadd.f32 %v6188_v11, %v6187_v36  ;;  %v6365_v32 = vpop.permute.xlu1 %6364 }
 0x48c   : > { %v6213_v49 = vsel %vm307_vm0, %v5860_v13, 0.0  ;;  %v6339_v52 = vsel %vm6323_vm8, %v6257_v55, %v6338_v2  ;;  %v6226_v46 = vadd.f32 %v6225_v42, %v6224_v17 }
 0x48d   : > { %v6258_v63 = vmul.f32 0.125, %v6177_v27  ;;  %v6202_v57 = vrot.slane %v6201_v31, 2  ;;  %v6214_v21 = vrot.slane %v6213_v49, 4  ;;  %v7347_v8 = vpop.f32.mrf.mxu1  ;;  %v6190_v56 = vrot.slane %v6189_v23, 1 }
 0x48e   : > { %v6265_v44 = vmul.f32 0.125, %v6226_v46 }
 0x48f   : > { %v6203_v54 = vadd.f32 %v6202_v57, %v6201_v31  ;;  %v6215_v30 = vadd.f32 %v6214_v21, %v6213_v49  ;;  %v6006_v22 = vpop.f32.mrf.mxu1  ;;  %v6340_v20 = vsel %vm6325_vm9, %v6258_v63, %v6339_v52  ;;  %v6191_v40 = vadd.f32 %v6190_v56, %v6189_v23 }
 0x490   : > { %v6227_v61 = vsel %vm307_vm0, %v6006_v22, 0.0  ;;  %7369 = vmatprep.mubr.msk.f32.mxu0 %vm307_vm0, %v6340_v20 }
 0x491   : > { %v6204_v43 = vrot.slane %v6203_v54, 1  ;;  %v6216_v38 = vrot.slane %v6215_v30, 2  ;;  %v6228_v37 = vrot.slane %v6227_v61, 4  ;;  %v7357_v3 = vpop.f32.mrf.mxu1  ;;  %v6260_v4 = vmul.f32 0.125, %v6191_v40 }
 0x493   : > { %v6205_v58 = vadd.f32 %v6204_v43, %v6203_v54  ;;  %v6217_v53 = vadd.f32 %v6216_v38, %v6215_v30  ;;  %v6229_v41 = vadd.f32 %v6228_v37, %v6227_v61  ;;  %v6341_v1 = vsel %vm6313_vm3, %v6260_v4, %v6259_v60 }
 0x494   : > { %v6342_v50 = vsel %vm6315_vm4, %v6261_v34, %v6341_v1 }
 0x495   : > { %v6262_v5 = vmul.f32 0.125, %v6205_v58  ;;  %v6218_v24 = vrot.slane %v6217_v53, 1  ;;  %v6230_v26 = vrot.slane %v6229_v41, 2 }
 0x497   : > { %v6343_v39 = vsel %vm6317_vm5, %v6262_v5, %v6342_v50  ;;  %v6219_v0 = vadd.f32 %v6218_v24, %v6217_v53  ;;  %v6231_v45 = vadd.f32 %v6230_v26, %v6229_v41 }
 0x498   : > { %v6344_v59 = vsel %vm6319_vm6, %v6263_v35, %v6343_v39 }
 0x499   : > { %v6264_v29 = vmul.f32 0.125, %v6219_v0  ;;  %v6232_v14 = vrot.slane %v6231_v45, 1 }
 0x49b   : > { %v6233_v10 = vadd.f32 %v6232_v14, %v6231_v45  ;;  %v6345_v16 = vsel %vm6321_vm7, %v6264_v29, %v6344_v59 }
 0x49c   : > { %v6346_v36 = vsel %vm6323_vm8, %v6265_v44, %v6345_v16 }
 0x49d   : > { %v6266_v6 = vmul.f32 0.125, %v6233_v10 }
 0x49f   : > { %v6347_v25 = vsel %vm6325_vm9, %v6266_v6, %v6346_v36 }
 0x4a0   : > { %7370 = vmatmul.mubr.msk.f32.gmra.mxu0 %vm307_vm0, %v6347_v25 }
 0x524   : > { %v7368_v18 = vpop.f32.mrf.mxu0 }
 0x525   : > { %v6447_v12 = vadd.f32 %v7368_v18, %v6365_v32 }
 0x526   : > { %v6441_v62 = vpop.f32.mrf.mxu0 }
 0x527   : > { %v6442_v55 = vadd.f32 %v6441_v62, %v6365_v32  ;;  %6462 = vrot.lane.b32.xlu0 %v6447_v12, %s7629_s25 }
 0x529   : > { %6460 = vst.msk [vmem:[%s164_s4] sm:$0xff] %vm307_vm0, %v6442_v55 }
 0x560   : > { %v7371_v48 = vpop.f32.mrf.mxu0 }
 0x561   : > { %v6457_v11 = vadd.f32 %v7371_v48, %v6365_v32 }
 0x562   : > { %v6451_v51 = vpop.f32.mrf.mxu0 }
 0x563   : > { %v6452_v9 = vadd.f32 %v6451_v51, %v6365_v32  ;;  %6474 = vrot.lane.b32.xlu0 %v6457_v11, %s7625_s27  ;;  %s6480_s27 = scalar_lea.sflag [#allocation3], %s162_s29 }
 0x565   : > { %6468 = vrot.lane.b32.xlu1 %v6452_v9, %s7626_s9  ;;  %s7563_s9 = scalar_lea.vmem %s8784_s6, 128 }
 0x566   : > { %p7564_p11 = scmp.ne.s32.totalorder %s8784_s6, %s7563_s9  ;;  %p7571_p1 = scmp.lt.s32.totalorder %s7569_s17, %s7563_s9 }
 0x568   : > { %p7565_p12 = pnand %p7564_p11, %p7689_p5  ;;  %p7572_p2 = por %p7571_p1, %p7570_p0 }
 0x56a   : > { %p7566_p13 = pneg %p7565_p12 }
 0x56c   : > { %p7573_p3 = pnand %p7572_p2, %p7566_p13 }
 0x599   : > { %v6463_v27 = vpop.permute.xlu0 %6462 }
 0x59a   : > { %6466 = vst.msk [vmem:[%s164_s4] sm:$0xff] %vm6465_vm10, %v6463_v27 }
 0x5d5   : > { %v6475_v13 = vpop.permute.xlu0 %6474 }
 0x5d7   : > { %v6469_v31 = vpop.permute.xlu1 %6468 }
 0x5d8   : > { %6472 = vst.msk [vmem:[%s164_s4] sm:$0xff] %vm6471_vm11, %v6469_v31 }
 0x5d9   : > { %6478 = vst.msk [vmem:[%s164_s4] sm:$0xff] %vm6477_vm12, %v6475_v13 }
 0x5da   : > { %7576 = shalt.err (!%p7573_p3)
}
 0x5db   : > { %s7577_s19 = scalar_lea.hbm %s8782_s10, 128  ;;  %s7581_s25 = scalar_lea.hbm %s8826_s3, 512 }
 0x5dc   : > { %p7578_p4 = scmp.ne.s32.totalorder %s8782_s10, %s7577_s19  ;;  %p7582_p9 = scmp.lt.s32.totalorder %s8782_s10, %s8826_s3 }
 0x5dd   : > { %p7583_p10 = scmp.lt.s32.totalorder %s7581_s25, %s7577_s19 }
 0x5de   : > { %p7579_p7 = pnand %p7578_p4, %p7689_p5 }
 0x5df   : > { %p7584_p11 = por %p7583_p10, %p7582_p9 }
 0x5e0   : > { %p7580_p8 = pneg %p7579_p7 }
 0x5e2   : > { %p7585_p12 = pnand %p7584_p11, %p7580_p8 }
 0x5e4   : > { %7588 = shalt.err (!%p7585_p12)
}
 0x5e5   : > { %7372 = dma.vmem_to_hbm [thread:$0]  (%p7689_p5), %s8784_s6, 128, %s8782_s10, %s6480_s27  }
 0x5e6 PF: > { %p7378_p13 = scmp.ge.s32.totalorder %s7623_s15, 2  ;;  %s6505_s29 = sand.u32 1, %s7611_s12  }
 0x5e7   : > { %s6506_s30 = scalar_lea.sflag [#allocation3], %s6505_s29 }
 0x5e8   : > { %p7375_p0 = pnand %p7378_p13, %p7693_p6 }
 0x5ea   : > { %p7376_p1 = pneg %p7375_p0 }
 0x5ec   : > { %7606 = dma.done.wait (%p7376_p1), %s6506_s30, 128  }
 0x5ed   : > { %7608 = vsyncadd (%p7376_p1), %s6506_s30, 4294967168  ;;  %p13_p2 = scmp.ge.s32.totalorder %s7676_s18, 6   ;;  %s8867_s12 = smov %s7615_s13 }
 0x5ee   : > { %s8868_s13 = smov %s7619_s14  ;;  %s8869_s14 = smov %s7687_s21 }
 0x5ef   : > { %s8870_s15 = smov %s7676_s18  ;;  %15 = sbr.rel (!%p13_p2) target bundleno = 3 (0x3), region = 67 }
 0x5f4   :  { %6511 = vsyncpa [#allocation3], 1 }
 0x5f5   :  { %6513 = vsyncpa [#allocation3 + $0x1], 1 }

</bundles_post_ra>
